<compile_context>
chip_gen: v7x
topology: tpu7x:2x2x1
jax: 0.10.0
libtpu: 0.0.40
codegen_flags: <defaults>
</compile_context>

<pallas_src>
import jax
import jax.numpy as jnp
from jax import lax
from jax.experimental import pallas as pl
from jax.experimental.pallas import tpu as pltpu

# ---- small CLIP-text config (synthetic, deterministic) ----------------------
B = 2          # batch
T = 8          # context length (seq)
VOCAB = 64     # vocab size (last id = EOT)
D = 32         # transformer width
H = 4          # attention heads
HD = D // H    # head dim
L = 2          # transformer layers
MLP = 4 * D    # mlp hidden
E = 16         # output embed dim (text_projection)
EP = ((E + 127) // 128) * 128   # lane-padded output width (>=128 -> unmasked stores)


def _layer_norm(v, w, b, eps=1e-5):
    mu = jnp.mean(v, axis=-1, keepdims=True)
    var = jnp.mean((v - mu) ** 2, axis=-1, keepdims=True)
    return (v - mu) * lax.rsqrt(var + eps) * w + b


def clip_text_layer_kernel(x_ref,        # [B*T, D]   f32  (read at l==0)
                           sel_ref,      # [B, B*T]   f32  one-hot EOT select
                           vecs_ref,     # [1, 6, D]  f32  ln1_w,ln1_b,ln2_w,ln2_b,ob,pb
                           qkvw_ref,     # [1, D, 3D] bf16 (Q third pre-scaled)
                           qkvb_ref,     # [1, 1, 3D] f32  (Q third pre-scaled)
                           ow_ref,       # [1, D, D]  bf16
                           fcw_ref,      # [1, D, MLP] bf16
                           fcb_ref,      # [1, 1, MLP] f32
                           pw_ref,       # [1, MLP, D] bf16
                           lnf_ref,      # [2, D]     f32  final LN scale, bias
                           tproj_ref,    # [D, EP]    bf16 (zero-padded past E)
                           out_ref,      # [B, EP]    f32
                           x_acc):       # VMEM scratch [B*T, D] f32 residual stream
    f32, bf16 = jnp.float32, jnp.bfloat16
    l = pl.program_id(0)

    @pl.when(l == 0)
    def _():
        x_acc[...] = x_ref[...]

    x = x_acc[...]                                  # [B*T, D] f32

    vecs = vecs_ref[0]                              # [6, D]
    ln1_w, ln1_b = vecs[0:1], vecs[1:2]
    ln2_w, ln2_b = vecs[2:3], vecs[3:4]
    attn_ob, mlp_ob = vecs[4:5], vecs[5:6]

    # causal additive mask (CLIP build_attention_mask): q attends to k <= q
    row = lax.broadcasted_iota(jnp.int32, (T, T), 0)
    col = lax.broadcasted_iota(jnp.int32, (T, T), 1)
    neg = jnp.where(col <= row, 0.0, -1e9).astype(f32)[None]    # [1, T, T]

    # ---- multi-head self-attention (pre-LN), fused QKV projection ----
    h = _layer_norm(x, ln1_w, ln1_b).astype(bf16)
    qkv = jnp.dot(h, qkvw_ref[0], preferred_element_type=f32) + qkvb_ref[0]  # [B*T, 3D]
    q, k, v = qkv[:, :D], qkv[:, D:2 * D], qkv[:, 2 * D:]

    heads = []
    for hh in range(H):                             # static unroll; see header note
        sl = slice(hh * HD, (hh + 1) * HD)
        qh = q[:, sl].reshape(B, T, HD).astype(bf16)
        kh = k[:, sl].reshape(B, T, HD).astype(bf16)
        vh = v[:, sl].reshape(B, T, HD).astype(bf16)
        s = jnp.einsum("bqd,bkd->bqk", qh, kh, preferred_element_type=f32) + neg
        s = s - jnp.max(s, axis=-1, keepdims=True)
        p = jnp.exp(s)
        p = p * pl.reciprocal(jnp.sum(p, axis=-1, keepdims=True), approx=True)
        o = jnp.einsum("bqk,bkd->bqd", p.astype(bf16), vh,
                       preferred_element_type=f32)              # [B, T, HD]
        heads.append(o.reshape(B * T, HD))

    # concat(o_h) @ W_o : one K=D contraction instead of H tiny K=HD dots
    o_cat = jnp.concatenate(heads, axis=-1).astype(bf16)        # [B*T, D]
    x = x + jnp.dot(o_cat, ow_ref[0], preferred_element_type=f32) + attn_ob

    # ---- MLP with QuickGELU ----
    h2 = _layer_norm(x, ln2_w, ln2_b).astype(bf16)
    m = jnp.dot(h2, fcw_ref[0], preferred_element_type=f32) + fcb_ref[0]
    m = m * jax.nn.sigmoid(1.702 * m)               # QuickGELU (f32, EUP)
    x = x + jnp.dot(m.astype(bf16), pw_ref[0], preferred_element_type=f32) + mlp_ob

    x_acc[...] = x

    # ---- tail: EOT rows first (one-hot matmul), then ln_final + projection ----
    @pl.when(l == pl.num_programs(0) - 1)
    def _():
        lnf = lnf_ref[...]                                      # [2, D]
        feat = jnp.dot(sel_ref[...], x, preferred_element_type=f32)   # [B, D]
        feat = _layer_norm(feat, lnf[0:1], lnf[1:2])
        out_ref[...] = jnp.dot(feat.astype(bf16), tproj_ref[...],
                               preferred_element_type=f32)      # [B, EP] lane-dense


def init_params(key):
    ks = jax.random.split(key, 20)
    s = 0.02
    return {
        "tok_emb": jax.random.normal(ks[0], (VOCAB, D), jnp.float32) * s,
        "pos_emb": jax.random.normal(ks[1], (T, D), jnp.float32) * s,
        "ln1_w": jnp.ones((L, 1, D), jnp.float32),
        "ln1_b": jnp.zeros((L, 1, D), jnp.float32),
        "qkv_w": jax.random.normal(ks[2], (L, D, 3 * D), jnp.float32) * s,
        "qkv_b": jax.random.normal(ks[7], (L, 1, 3 * D), jnp.float32) * s,
        "ow": jax.random.normal(ks[3], (L, D, D), jnp.float32) * s,
        "ob": jax.random.normal(ks[8], (L, 1, D), jnp.float32) * s,
        "ln2_w": jnp.ones((L, 1, D), jnp.float32),
        "ln2_b": jnp.zeros((L, 1, D), jnp.float32),
        "fc_w": jax.random.normal(ks[4], (L, D, MLP), jnp.float32) * s,
        "fc_b": jax.random.normal(ks[9], (L, 1, MLP), jnp.float32) * s,
        "pw": jax.random.normal(ks[5], (L, MLP, D), jnp.float32) * s,
        "pb": jax.random.normal(ks[10], (L, 1, D), jnp.float32) * s,
        "lnf_w": jnp.ones((1, D), jnp.float32),
        "lnf_b": jnp.zeros((1, D), jnp.float32),
        "tproj": jax.random.normal(ks[6], (D, E), jnp.float32) * s,
    }


def _prep_weights(params):
    """Host-side packing: fold 1/sqrt(HD) into the Q third of fused QKV, pack the
    small D-wide vectors into one [L,6,D] slab, pad text_projection to 128 lanes,
    cast matmul weights to bf16."""
    bf16 = jnp.bfloat16
    scale = 1.0 / (HD ** 0.5)
    qscale = jnp.concatenate(
        [jnp.full((D,), scale, jnp.float32), jnp.ones((2 * D,), jnp.float32)])
    qkv_w = (params["qkv_w"] * qscale[None, None, :]).astype(bf16)   # [L, D, 3D]
    qkv_b = params["qkv_b"] * qscale[None, None, :]                  # [L, 1, 3D] f32

    vecs = jnp.stack([params["ln1_w"][:, 0], params["ln1_b"][:, 0],
                      params["ln2_w"][:, 0], params["ln2_b"][:, 0],
                      params["ob"][:, 0], params["pb"][:, 0]], axis=1)  # [L, 6, D]

    lnf = jnp.concatenate([params["lnf_w"], params["lnf_b"]], axis=0)   # [2, D]

    tproj = jnp.zeros((D, EP), bf16).at[:, :E].set(params["tproj"].astype(bf16))

    return dict(vecs=vecs, qkv_w=qkv_w, qkv_b=qkv_b,
                ow=params["ow"].astype(bf16),
                fcw=params["fc_w"].astype(bf16), fcb=params["fc_b"],
                pw=params["pw"].astype(bf16), lnf=lnf, tproj=tproj)


@jax.jit
def encode_text(text, params):
    # plain-JAX glue: embedding gather + positional embedding, one-hot EOT select
    x = jnp.take(params["tok_emb"], text, axis=0) + params["pos_emb"][None]  # [B,T,D]
    x = x.reshape(B * T, D).astype(jnp.float32)
    eot = jnp.argmax(text, axis=-1)                                          # [B]
    sel = jax.nn.one_hot(jnp.arange(B) * T + eot, B * T, dtype=jnp.float32)  # [B,B*T]

    w = _prep_weights(params)

    grid_spec = pltpu.PrefetchScalarGridSpec(
        num_scalar_prefetch=0,
        grid=(L,),                                  # one grid step per layer
        in_specs=[
            pl.BlockSpec((B * T, D), lambda l: (0, 0)),        # x (resident)
            pl.BlockSpec((B, B * T), lambda l: (0, 0)),        # sel (resident)
            pl.BlockSpec((1, 6, D), lambda l: (l, 0, 0)),      # packed ln/bias slab
            pl.BlockSpec((1, D, 3 * D), lambda l: (l, 0, 0)),  # fused QKV weight
            pl.BlockSpec((1, 1, 3 * D), lambda l: (l, 0, 0)),  # fused QKV bias
            pl.BlockSpec((1, D, D), lambda l: (l, 0, 0)),      # attn out-proj
            pl.BlockSpec((1, D, MLP), lambda l: (l, 0, 0)),    # mlp fc weight
            pl.BlockSpec((1, 1, MLP), lambda l: (l, 0, 0)),    # mlp fc bias
            pl.BlockSpec((1, MLP, D), lambda l: (l, 0, 0)),    # mlp proj weight
            pl.BlockSpec((2, D), lambda l: (0, 0)),            # final LN (resident)
            pl.BlockSpec((D, EP), lambda l: (0, 0)),           # text_projection
        ],
        out_specs=pl.BlockSpec((B, EP), lambda l: (0, 0)),     # written once at end
        scratch_shapes=[pltpu.VMEM((B * T, D), jnp.float32)],  # residual stream
    )

    out = pl.pallas_call(
        clip_text_layer_kernel,
        out_shape=jax.ShapeDtypeStruct((B, EP), jnp.float32),
        grid_spec=grid_spec,
        compiler_params=pltpu.CompilerParams(
            dimension_semantics=("arbitrary",),     # layers are sequential
            vmem_limit_bytes=32 << 20),
    )(x, sel, w["vecs"], w["qkv_w"], w["qkv_b"], w["ow"],
      w["fcw"], w["fcb"], w["pw"], w["lnf"], w["tproj"])
    return out[:, :E]                                                        # [B, E]


def encode_text_ref(text, params):
    # pure-JAX f32 reference for correctness checking
    x = jnp.take(params["tok_emb"], text, axis=0) + params["pos_emb"][None]
    mask = jnp.tril(jnp.ones((T, T), bool))
    for l in range(L):
        h = _layer_norm(x, params["ln1_w"][l], params["ln1_b"][l])
        qkv = h @ params["qkv_w"][l] + params["qkv_b"][l]
        q, k, v = jnp.split(qkv, 3, axis=-1)
        qh = q.reshape(B, T, H, HD).transpose(0, 2, 1, 3)
        kh = k.reshape(B, T, H, HD).transpose(0, 2, 1, 3)
        vh = v.reshape(B, T, H, HD).transpose(0, 2, 1, 3)
        s = jnp.einsum("bhqd,bhkd->bhqk", qh, kh) / (HD ** 0.5)
        s = jnp.where(mask, s, -1e9)
        p = jax.nn.softmax(s, axis=-1)
        a = jnp.einsum("bhqk,bhkd->bhqd", p, vh).transpose(0, 2, 1, 3).reshape(B, T, D)
        x = x + a @ params["ow"][l] + params["ob"][l]
        h2 = _layer_norm(x, params["ln2_w"][l], params["ln2_b"][l])
        m = h2 @ params["fc_w"][l] + params["fc_b"][l]
        m = m * jax.nn.sigmoid(1.702 * m)
        x = x + m @ params["pw"][l] + params["pb"][l]
    x = _layer_norm(x, params["lnf_w"], params["lnf_b"])
    eot = jnp.argmax(text, axis=-1)
    feat = x[jnp.arange(B), eot]
    return feat @ params["tproj"]


if __name__ == "__main__":
    key = jax.random.PRNGKey(0)
    k_par, k_txt = jax.random.split(key)
    params = init_params(k_par)

    # deterministic token ids; last position holds the EOT (largest) token id,
    # matching CLIP's argmax-based EOT selection.
    text = jax.random.randint(k_txt, (B, T), 1, VOCAB - 1, dtype=jnp.int32)
    text = text.at[:, -1].set(VOCAB - 1)

    out = encode_text(text, params)
    out = jax.block_until_ready(out)

    ref = encode_text_ref(text, params)
    assert out.shape == (B, E)
    assert bool(jnp.all(jnp.isfinite(out)))
    # kernel runs bf16 MXU matmuls with f32 accumulation vs. a pure-f32 reference
    assert bool(jnp.allclose(out, ref, rtol=2e-2, atol=2e-2))
    print("KERNEL_OK")
</pallas_src>

<mosaic_0001>
module attributes {stable_mosaic.version = 11 : i64} {
  func.func @clip_text_layer_kernel(%arg0: i32, %arg1: memref<16x32xf32, #tpu.memory_space<vmem>>, %arg2: memref<2x16xf32, #tpu.memory_space<vmem>>, %arg3: memref<1x6x32xf32, #tpu.memory_space<vmem>>, %arg4: memref<1x32x96xbf16, #tpu.memory_space<vmem>>, %arg5: memref<1x1x96xf32, #tpu.memory_space<vmem>>, %arg6: memref<1x32x32xbf16, #tpu.memory_space<vmem>>, %arg7: memref<1x32x128xbf16, #tpu.memory_space<vmem>>, %arg8: memref<1x1x128xf32, #tpu.memory_space<vmem>>, %arg9: memref<1x128x32xbf16, #tpu.memory_space<vmem>>, %arg10: memref<2x32xf32, #tpu.memory_space<vmem>>, %arg11: memref<32x128xbf16, #tpu.memory_space<vmem>>, %arg12: memref<2x128xf32, #tpu.memory_space<vmem>>, %arg13: memref<16x32xf32, #tpu.memory_space<vmem>>) attributes {dimension_semantics = [#tpu.dimension_semantics<arbitrary>], iteration_bounds = array<i64: 2>, scalar_prefetch = 0 : i64, scratch_operands = 1 : i64, tpu.core_type = #tpu.core_type<tc>, window_params = [{pipeline_mode = #tpu.pipeline_mode<synchronous>, transform_indices = @transform_0, window_bounds = array<i64: 16, 32>}, {pipeline_mode = #tpu.pipeline_mode<synchronous>, transform_indices = @transform_1, window_bounds = array<i64: 2, 16>}, {transform_indices = @transform_2, window_bounds = array<i64: 1, 6, 32>}, {transform_indices = @transform_3, window_bounds = array<i64: 1, 32, 96>}, {transform_indices = @transform_4, window_bounds = array<i64: 1, 1, 96>}, {transform_indices = @transform_5, window_bounds = array<i64: 1, 32, 32>}, {transform_indices = @transform_6, window_bounds = array<i64: 1, 32, 128>}, {transform_indices = @transform_7, window_bounds = array<i64: 1, 1, 128>}, {transform_indices = @transform_8, window_bounds = array<i64: 1, 128, 32>}, {pipeline_mode = #tpu.pipeline_mode<synchronous>, transform_indices = @transform_9, window_bounds = array<i64: 2, 32>}, {pipeline_mode = #tpu.pipeline_mode<synchronous>, transform_indices = @transform_10, window_bounds = array<i64: 32, 128>}, {pipeline_mode = #tpu.pipeline_mode<synchronous>, transform_indices = @transform_11, window_bounds = array<i64: 2, 128>}]} {
    %c0_i32 = arith.constant 0 : i32
    %0 = arith.cmpi eq, %arg0, %c0_i32 : i32
    %1 = arith.extui %0 : i1 to i32
    %c0_i32_0 = arith.constant 0 : i32
    %2 = arith.cmpi ne, %1, %c0_i32_0 : i32
    scf.if %2 {
      %c0_59 = arith.constant 0 : index
      %c0_60 = arith.constant 0 : index
      %209 = vector.load %arg1[%c0_59, %c0_60] : memref<16x32xf32, #tpu.memory_space<vmem>>, vector<16x32xf32>
      %c0_61 = arith.constant 0 : index
      %c0_62 = arith.constant 0 : index
      %210 = vector.load %arg13[%c0_61, %c0_62] : memref<16x32xf32, #tpu.memory_space<vmem>>, vector<16x32xf32>
      tpu.vector_store %arg13[%c0_61, %c0_62], %209 {strides = array<i32>} : memref<16x32xf32, #tpu.memory_space<vmem>>, vector<16x32xf32>,
    } else {
    }
    %c0 = arith.constant 0 : index
    %c0_1 = arith.constant 0 : index
    %3 = vector.load %arg13[%c0, %c0_1] : memref<16x32xf32, #tpu.memory_space<vmem>>, vector<16x32xf32>
    %c0_2 = arith.constant 0 : index
    %c0_3 = arith.constant 0 : index
    %c0_4 = arith.constant 0 : index
    %4 = vector.load %arg3[%c0_2, %c0_3, %c0_4] : memref<1x6x32xf32, #tpu.memory_space<vmem>>, vector<1x6x32xf32>
    %5 = vector.shape_cast %4 : vector<1x6x32xf32> to vector<6x32xf32>
    %6 = vector.extract_strided_slice %5 {offsets = [0, 0], sizes = [1, 32], strides = [1, 1]} : vector<6x32xf32> to vector<1x32xf32>
    %7 = vector.extract_strided_slice %5 {offsets = [1, 0], sizes = [1, 32], strides = [1, 1]} : vector<6x32xf32> to vector<1x32xf32>
    %8 = vector.extract_strided_slice %5 {offsets = [2, 0], sizes = [1, 32], strides = [1, 1]} : vector<6x32xf32> to vector<1x32xf32>
    %9 = vector.extract_strided_slice %5 {offsets = [3, 0], sizes = [1, 32], strides = [1, 1]} : vector<6x32xf32> to vector<1x32xf32>
    %10 = vector.extract_strided_slice %5 {offsets = [4, 0], sizes = [1, 32], strides = [1, 1]} : vector<6x32xf32> to vector<1x32xf32>
    %11 = vector.extract_strided_slice %5 {offsets = [5, 0], sizes = [1, 32], strides = [1, 1]} : vector<6x32xf32> to vector<1x32xf32>
    %12 = tpu.iota {dimensions = array<i32: 0>} : vector<8x8xi32>
    %13 = tpu.iota {dimensions = array<i32: 1>} : vector<8x8xi32>
    %14 = arith.cmpi sle, %13, %12 : vector<8x8xi32>
    %cst = arith.constant 0.000000e+00 : f32
    %cst_5 = arith.constant -1.000000e+09 : f32
    %15 = vector.broadcast %cst : f32 to vector<8x8xf32>
    %16 = vector.broadcast %cst_5 : f32 to vector<8x8xf32>
    %17 = arith.select %14, %15, %16 : vector<8x8xi1>, vector<8x8xf32>
    %18 = vector.shape_cast %17 : vector<8x8xf32> to vector<1x8x8xf32>
    %cst_6 = arith.constant dense<0.000000e+00> : vector<16xf32>
    %19 = vector.multi_reduction <add>, %3, %cst_6 [1] : vector<16x32xf32> to vector<16xf32>
    %20 = vector.shape_cast %19 : vector<16xf32> to vector<16x1xf32>
    %cst_7 = arith.constant 3.200000e+01 : f32
    %21 = vector.broadcast %cst_7 : f32 to vector<16x1xf32>
    %22 = arith.divf %20, %21 : vector<16x1xf32>
    %23 = vector.broadcast %22 : vector<16x1xf32> to vector<16x32xf32>
    %24 = arith.subf %3, %23 : vector<16x32xf32>
    %25 = arith.mulf %24, %24 : vector<16x32xf32>
    %cst_8 = arith.constant dense<0.000000e+00> : vector<16xf32>
    %26 = vector.multi_reduction <add>, %25, %cst_8 [1] : vector<16x32xf32> to vector<16xf32>
    %27 = vector.shape_cast %26 : vector<16xf32> to vector<16x1xf32>
    %cst_9 = arith.constant 3.200000e+01 : f32
    %28 = vector.broadcast %cst_9 : f32 to vector<16x1xf32>
    %29 = arith.divf %27, %28 : vector<16x1xf32>
    %30 = vector.broadcast %22 : vector<16x1xf32> to vector<16x32xf32>
    %31 = arith.subf %3, %30 : vector<16x32xf32>
    %cst_10 = arith.constant 9.99999974E-6 : f32
    %32 = vector.broadcast %cst_10 : f32 to vector<16x1xf32>
    %33 = arith.addf %29, %32 : vector<16x1xf32>
    %34 = math.rsqrt %33 : vector<16x1xf32>
    %35 = vector.broadcast %34 : vector<16x1xf32> to vector<16x32xf32>
    %36 = arith.mulf %31, %35 : vector<16x32xf32>
    %37 = vector.broadcast %6 : vector<1x32xf32> to vector<16x32xf32>
    %38 = arith.mulf %36, %37 : vector<16x32xf32>
    %39 = vector.broadcast %7 : vector<1x32xf32> to vector<16x32xf32>
    %40 = arith.addf %38, %39 : vector<16x32xf32>
    %41 = arith.truncf %40 : vector<16x32xf32> to vector<16x32xbf16>
    %c0_11 = arith.constant 0 : index
    %c0_12 = arith.constant 0 : index
    %c0_13 = arith.constant 0 : index
    %42 = vector.load %arg4[%c0_11, %c0_12, %c0_13] : memref<1x32x96xbf16, #tpu.memory_space<vmem>>, vector<1x32x96xbf16>
    %43 = vector.shape_cast %42 : vector<1x32x96xbf16> to vector<32x96xbf16>
    %cst_14 = arith.constant dense<0.000000e+00> : vector<16x96xf32>
    %44 = tpu.matmul %41, %43, %cst_14 {dimension_numbers = #tpu.dot_dimension_numbers<[1], [0], [0], [1], [0, 0, 1, 1], [], []>} : vector<16x32xbf16>, vector<32x96xbf16>, vector<16x96xf32> -> vector<16x96xf32>
    %c0_15 = arith.constant 0 : index
    %c0_16 = arith.constant 0 : index
    %c0_17 = arith.constant 0 : index
    %45 = vector.load %arg5[%c0_15, %c0_16, %c0_17] : memref<1x1x96xf32, #tpu.memory_space<vmem>>, vector<1x1x96xf32>
    %46 = vector.shape_cast %45 : vector<1x1x96xf32> to vector<1x96xf32>
    %47 = vector.broadcast %46 : vector<1x96xf32> to vector<16x96xf32>
    %48 = arith.addf %44, %47 : vector<16x96xf32>
    %49 = vector.extract_strided_slice %48 {offsets = [0, 0], sizes = [16, 32], strides = [1, 1]} : vector<16x96xf32> to vector<16x32xf32>
    %50 = vector.extract_strided_slice %48 {offsets = [0, 32], sizes = [16, 32], strides = [1, 1]} : vector<16x96xf32> to vector<16x32xf32>
    %51 = vector.extract_strided_slice %48 {offsets = [0, 64], sizes = [16, 32], strides = [1, 1]} : vector<16x96xf32> to vector<16x32xf32>
    %52 = vector.extract_strided_slice %49 {offsets = [0, 0], sizes = [16, 8], strides = [1, 1]} : vector<16x32xf32> to vector<16x8xf32>
    %53 = vector.shape_cast %52 : vector<16x8xf32> to vector<2x8x8xf32>
    %54 = arith.truncf %53 : vector<2x8x8xf32> to vector<2x8x8xbf16>
    %55 = vector.extract_strided_slice %50 {offsets = [0, 0], sizes = [16, 8], strides = [1, 1]} : vector<16x32xf32> to vector<16x8xf32>
    %56 = vector.shape_cast %55 : vector<16x8xf32> to vector<2x8x8xf32>
    %57 = arith.truncf %56 : vector<2x8x8xf32> to vector<2x8x8xbf16>
    %58 = vector.extract_strided_slice %51 {offsets = [0, 0], sizes = [16, 8], strides = [1, 1]} : vector<16x32xf32> to vector<16x8xf32>
    %59 = vector.shape_cast %58 : vector<16x8xf32> to vector<2x8x8xf32>
    %60 = arith.truncf %59 : vector<2x8x8xf32> to vector<2x8x8xbf16>
    "tpu.trace_start"() <{level = 10 : i32, message = "bqd,bkd->bqk"}> : () -> ()
    %cst_18 = arith.constant dense<0.000000e+00> : vector<2x8x8xf32>
    %61 = tpu.matmul %54, %57, %cst_18 {dimension_numbers = #tpu.dot_dimension_numbers<[2], [2], [1], [1], [0, 0, 0, 1, 1, 1], [0], [0]>} : vector<2x8x8xbf16>, vector<2x8x8xbf16>, vector<2x8x8xf32> -> vector<2x8x8xf32>
    "tpu.trace_stop"() : () -> ()
    %62 = vector.broadcast %18 : vector<1x8x8xf32> to vector<2x8x8xf32>
    %63 = arith.addf %61, %62 : vector<2x8x8xf32>
    %cst_19 = arith.constant dense<0xFF800000> : vector<2x8xf32>
    %64 = vector.multi_reduction <maximumf>, %63, %cst_19 [2] : vector<2x8x8xf32> to vector<2x8xf32>
    %65 = vector.shape_cast %64 : vector<2x8xf32> to vector<2x8x1xf32>
    %66 = vector.broadcast %65 : vector<2x8x1xf32> to vector<2x8x8xf32>
    %67 = arith.subf %63, %66 : vector<2x8x8xf32>
    %68 = math.exp %67 : vector<2x8x8xf32>
    %cst_20 = arith.constant dense<0.000000e+00> : vector<2x8xf32>
    %69 = vector.multi_reduction <add>, %68, %cst_20 [2] : vector<2x8x8xf32> to vector<2x8xf32>
    %70 = vector.shape_cast %69 : vector<2x8xf32> to vector<2x8x1xf32>
    %71 = tpu.reciprocal %70 {approx = true} : vector<2x8x1xf32> -> vector<2x8x1xf32>
    %72 = vector.broadcast %71 : vector<2x8x1xf32> to vector<2x8x8xf32>
    %73 = arith.mulf %68, %72 : vector<2x8x8xf32>
    %74 = arith.truncf %73 : vector<2x8x8xf32> to vector<2x8x8xbf16>
    "tpu.trace_start"() <{level = 10 : i32, message = "bqk,bkd->bqd"}> : () -> ()
    %cst_21 = arith.constant dense<0.000000e+00> : vector<2x8x8xf32>
    %75 = tpu.matmul %74, %60, %cst_21 {dimension_numbers = #tpu.dot_dimension_numbers<[2], [1], [1], [2], [0, 0, 0, 1, 1, 2], [0], [0]>} : vector<2x8x8xbf16>, vector<2x8x8xbf16>, vector<2x8x8xf32> -> vector<2x8x8xf32>
    "tpu.trace_stop"() : () -> ()
    %76 = vector.shape_cast %75 : vector<2x8x8xf32> to vector<16x8xf32>
    %77 = vector.extract_strided_slice %49 {offsets = [0, 8], sizes = [16, 8], strides = [1, 1]} : vector<16x32xf32> to vector<16x8xf32>
    %78 = vector.shape_cast %77 : vector<16x8xf32> to vector<2x8x8xf32>
    %79 = arith.truncf %78 : vector<2x8x8xf32> to vector<2x8x8xbf16>
    %80 = vector.extract_strided_slice %50 {offsets = [0, 8], sizes = [16, 8], strides = [1, 1]} : vector<16x32xf32> to vector<16x8xf32>
    %81 = vector.shape_cast %80 : vector<16x8xf32> to vector<2x8x8xf32>
    %82 = arith.truncf %81 : vector<2x8x8xf32> to vector<2x8x8xbf16>
    %83 = vector.extract_strided_slice %51 {offsets = [0, 8], sizes = [16, 8], strides = [1, 1]} : vector<16x32xf32> to vector<16x8xf32>
    %84 = vector.shape_cast %83 : vector<16x8xf32> to vector<2x8x8xf32>
    %85 = arith.truncf %84 : vector<2x8x8xf32> to vector<2x8x8xbf16>
    "tpu.trace_start"() <{level = 10 : i32, message = "bqd,bkd->bqk"}> : () -> ()
    %cst_22 = arith.constant dense<0.000000e+00> : vector<2x8x8xf32>
    %86 = tpu.matmul %79, %82, %cst_22 {dimension_numbers = #tpu.dot_dimension_numbers<[2], [2], [1], [1], [0, 0, 0, 1, 1, 1], [0], [0]>} : vector<2x8x8xbf16>, vector<2x8x8xbf16>, vector<2x8x8xf32> -> vector<2x8x8xf32>
    "tpu.trace_stop"() : () -> ()
    %87 = vector.broadcast %18 : vector<1x8x8xf32> to vector<2x8x8xf32>
    %88 = arith.addf %86, %87 : vector<2x8x8xf32>
    %cst_23 = arith.constant dense<0xFF800000> : vector<2x8xf32>
    %89 = vector.multi_reduction <maximumf>, %88, %cst_23 [2] : vector<2x8x8xf32> to vector<2x8xf32>
    %90 = vector.shape_cast %89 : vector<2x8xf32> to vector<2x8x1xf32>
    %91 = vector.broadcast %90 : vector<2x8x1xf32> to vector<2x8x8xf32>
    %92 = arith.subf %88, %91 : vector<2x8x8xf32>
    %93 = math.exp %92 : vector<2x8x8xf32>
    %cst_24 = arith.constant dense<0.000000e+00> : vector<2x8xf32>
    %94 = vector.multi_reduction <add>, %93, %cst_24 [2] : vector<2x8x8xf32> to vector<2x8xf32>
    %95 = vector.shape_cast %94 : vector<2x8xf32> to vector<2x8x1xf32>
    %96 = tpu.reciprocal %95 {approx = true} : vector<2x8x1xf32> -> vector<2x8x1xf32>
    %97 = vector.broadcast %96 : vector<2x8x1xf32> to vector<2x8x8xf32>
    %98 = arith.mulf %93, %97 : vector<2x8x8xf32>
    %99 = arith.truncf %98 : vector<2x8x8xf32> to vector<2x8x8xbf16>
    "tpu.trace_start"() <{level = 10 : i32, message = "bqk,bkd->bqd"}> : () -> ()
    %cst_25 = arith.constant dense<0.000000e+00> : vector<2x8x8xf32>
    %100 = tpu.matmul %99, %85, %cst_25 {dimension_numbers = #tpu.dot_dimension_numbers<[2], [1], [1], [2], [0, 0, 0, 1, 1, 2], [0], [0]>} : vector<2x8x8xbf16>, vector<2x8x8xbf16>, vector<2x8x8xf32> -> vector<2x8x8xf32>
    "tpu.trace_stop"() : () -> ()
    %101 = vector.shape_cast %100 : vector<2x8x8xf32> to vector<16x8xf32>
    %102 = vector.extract_strided_slice %49 {offsets = [0, 16], sizes = [16, 8], strides = [1, 1]} : vector<16x32xf32> to vector<16x8xf32>
    %103 = vector.shape_cast %102 : vector<16x8xf32> to vector<2x8x8xf32>
    %104 = arith.truncf %103 : vector<2x8x8xf32> to vector<2x8x8xbf16>
    %105 = vector.extract_strided_slice %50 {offsets = [0, 16], sizes = [16, 8], strides = [1, 1]} : vector<16x32xf32> to vector<16x8xf32>
    %106 = vector.shape_cast %105 : vector<16x8xf32> to vector<2x8x8xf32>
    %107 = arith.truncf %106 : vector<2x8x8xf32> to vector<2x8x8xbf16>
    %108 = vector.extract_strided_slice %51 {offsets = [0, 16], sizes = [16, 8], strides = [1, 1]} : vector<16x32xf32> to vector<16x8xf32>
    %109 = vector.shape_cast %108 : vector<16x8xf32> to vector<2x8x8xf32>
    %110 = arith.truncf %109 : vector<2x8x8xf32> to vector<2x8x8xbf16>
    "tpu.trace_start"() <{level = 10 : i32, message = "bqd,bkd->bqk"}> : () -> ()
    %cst_26 = arith.constant dense<0.000000e+00> : vector<2x8x8xf32>
    %111 = tpu.matmul %104, %107, %cst_26 {dimension_numbers = #tpu.dot_dimension_numbers<[2], [2], [1], [1], [0, 0, 0, 1, 1, 1], [0], [0]>} : vector<2x8x8xbf16>, vector<2x8x8xbf16>, vector<2x8x8xf32> -> vector<2x8x8xf32>
    "tpu.trace_stop"() : () -> ()
    %112 = vector.broadcast %18 : vector<1x8x8xf32> to vector<2x8x8xf32>
    %113 = arith.addf %111, %112 : vector<2x8x8xf32>
    %cst_27 = arith.constant dense<0xFF800000> : vector<2x8xf32>
    %114 = vector.multi_reduction <maximumf>, %113, %cst_27 [2] : vector<2x8x8xf32> to vector<2x8xf32>
    %115 = vector.shape_cast %114 : vector<2x8xf32> to vector<2x8x1xf32>
    %116 = vector.broadcast %115 : vector<2x8x1xf32> to vector<2x8x8xf32>
    %117 = arith.subf %113, %116 : vector<2x8x8xf32>
    %118 = math.exp %117 : vector<2x8x8xf32>
    %cst_28 = arith.constant dense<0.000000e+00> : vector<2x8xf32>
    %119 = vector.multi_reduction <add>, %118, %cst_28 [2] : vector<2x8x8xf32> to vector<2x8xf32>
    %120 = vector.shape_cast %119 : vector<2x8xf32> to vector<2x8x1xf32>
    %121 = tpu.reciprocal %120 {approx = true} : vector<2x8x1xf32> -> vector<2x8x1xf32>
    %122 = vector.broadcast %121 : vector<2x8x1xf32> to vector<2x8x8xf32>
    %123 = arith.mulf %118, %122 : vector<2x8x8xf32>
    %124 = arith.truncf %123 : vector<2x8x8xf32> to vector<2x8x8xbf16>
    "tpu.trace_start"() <{level = 10 : i32, message = "bqk,bkd->bqd"}> : () -> ()
    %cst_29 = arith.constant dense<0.000000e+00> : vector<2x8x8xf32>
    %125 = tpu.matmul %124, %110, %cst_29 {dimension_numbers = #tpu.dot_dimension_numbers<[2], [1], [1], [2], [0, 0, 0, 1, 1, 2], [0], [0]>} : vector<2x8x8xbf16>, vector<2x8x8xbf16>, vector<2x8x8xf32> -> vector<2x8x8xf32>
    "tpu.trace_stop"() : () -> ()
    %126 = vector.shape_cast %125 : vector<2x8x8xf32> to vector<16x8xf32>
    %127 = vector.extract_strided_slice %49 {offsets = [0, 24], sizes = [16, 8], strides = [1, 1]} : vector<16x32xf32> to vector<16x8xf32>
    %128 = vector.shape_cast %127 : vector<16x8xf32> to vector<2x8x8xf32>
    %129 = arith.truncf %128 : vector<2x8x8xf32> to vector<2x8x8xbf16>
    %130 = vector.extract_strided_slice %50 {offsets = [0, 24], sizes = [16, 8], strides = [1, 1]} : vector<16x32xf32> to vector<16x8xf32>
    %131 = vector.shape_cast %130 : vector<16x8xf32> to vector<2x8x8xf32>
    %132 = arith.truncf %131 : vector<2x8x8xf32> to vector<2x8x8xbf16>
    %133 = vector.extract_strided_slice %51 {offsets = [0, 24], sizes = [16, 8], strides = [1, 1]} : vector<16x32xf32> to vector<16x8xf32>
    %134 = vector.shape_cast %133 : vector<16x8xf32> to vector<2x8x8xf32>
    %135 = arith.truncf %134 : vector<2x8x8xf32> to vector<2x8x8xbf16>
    "tpu.trace_start"() <{level = 10 : i32, message = "bqd,bkd->bqk"}> : () -> ()
    %cst_30 = arith.constant dense<0.000000e+00> : vector<2x8x8xf32>
    %136 = tpu.matmul %129, %132, %cst_30 {dimension_numbers = #tpu.dot_dimension_numbers<[2], [2], [1], [1], [0, 0, 0, 1, 1, 1], [0], [0]>} : vector<2x8x8xbf16>, vector<2x8x8xbf16>, vector<2x8x8xf32> -> vector<2x8x8xf32>
    "tpu.trace_stop"() : () -> ()
    %137 = vector.broadcast %18 : vector<1x8x8xf32> to vector<2x8x8xf32>
    %138 = arith.addf %136, %137 : vector<2x8x8xf32>
    %cst_31 = arith.constant dense<0xFF800000> : vector<2x8xf32>
    %139 = vector.multi_reduction <maximumf>, %138, %cst_31 [2] : vector<2x8x8xf32> to vector<2x8xf32>
    %140 = vector.shape_cast %139 : vector<2x8xf32> to vector<2x8x1xf32>
    %141 = vector.broadcast %140 : vector<2x8x1xf32> to vector<2x8x8xf32>
    %142 = arith.subf %138, %141 : vector<2x8x8xf32>
    %143 = math.exp %142 : vector<2x8x8xf32>
    %cst_32 = arith.constant dense<0.000000e+00> : vector<2x8xf32>
    %144 = vector.multi_reduction <add>, %143, %cst_32 [2] : vector<2x8x8xf32> to vector<2x8xf32>
    %145 = vector.shape_cast %144 : vector<2x8xf32> to vector<2x8x1xf32>
    %146 = tpu.reciprocal %145 {approx = true} : vector<2x8x1xf32> -> vector<2x8x1xf32>
    %147 = vector.broadcast %146 : vector<2x8x1xf32> to vector<2x8x8xf32>
    %148 = arith.mulf %143, %147 : vector<2x8x8xf32>
    %149 = arith.truncf %148 : vector<2x8x8xf32> to vector<2x8x8xbf16>
    "tpu.trace_start"() <{level = 10 : i32, message = "bqk,bkd->bqd"}> : () -> ()
    %cst_33 = arith.constant dense<0.000000e+00> : vector<2x8x8xf32>
    %150 = tpu.matmul %149, %135, %cst_33 {dimension_numbers = #tpu.dot_dimension_numbers<[2], [1], [1], [2], [0, 0, 0, 1, 1, 2], [0], [0]>} : vector<2x8x8xbf16>, vector<2x8x8xbf16>, vector<2x8x8xf32> -> vector<2x8x8xf32>
    "tpu.trace_stop"() : () -> ()
    %151 = vector.shape_cast %150 : vector<2x8x8xf32> to vector<16x8xf32>
    %152 = tpu.concatenate %76, %101, %126, %151 in 1 : vector<16x8xf32>, vector<16x8xf32>, vector<16x8xf32>, vector<16x8xf32> -> vector<16x32xf32>
    %153 = arith.truncf %152 : vector<16x32xf32> to vector<16x32xbf16>
    %c0_34 = arith.constant 0 : index
    %c0_35 = arith.constant 0 : index
    %c0_36 = arith.constant 0 : index
    %154 = vector.load %arg6[%c0_34, %c0_35, %c0_36] : memref<1x32x32xbf16, #tpu.memory_space<vmem>>, vector<1x32x32xbf16>
    %155 = vector.shape_cast %154 : vector<1x32x32xbf16> to vector<32x32xbf16>
    %cst_37 = arith.constant dense<0.000000e+00> : vector<16x32xf32>
    %156 = tpu.matmul %153, %155, %cst_37 {dimension_numbers = #tpu.dot_dimension_numbers<[1], [0], [0], [1], [0, 0, 1, 1], [], []>} : vector<16x32xbf16>, vector<32x32xbf16>, vector<16x32xf32> -> vector<16x32xf32>
    %157 = arith.addf %3, %156 : vector<16x32xf32>
    %158 = vector.broadcast %10 : vector<1x32xf32> to vector<16x32xf32>
    %159 = arith.addf %157, %158 : vector<16x32xf32>
    %cst_38 = arith.constant dense<0.000000e+00> : vector<16xf32>
    %160 = vector.multi_reduction <add>, %159, %cst_38 [1] : vector<16x32xf32> to vector<16xf32>
    %161 = vector.shape_cast %160 : vector<16xf32> to vector<16x1xf32>
    %cst_39 = arith.constant 3.200000e+01 : f32
    %162 = vector.broadcast %cst_39 : f32 to vector<16x1xf32>
    %163 = arith.divf %161, %162 : vector<16x1xf32>
    %164 = vector.broadcast %163 : vector<16x1xf32> to vector<16x32xf32>
    %165 = arith.subf %159, %164 : vector<16x32xf32>
    %166 = arith.mulf %165, %165 : vector<16x32xf32>
    %cst_40 = arith.constant dense<0.000000e+00> : vector<16xf32>
    %167 = vector.multi_reduction <add>, %166, %cst_40 [1] : vector<16x32xf32> to vector<16xf32>
    %168 = vector.shape_cast %167 : vector<16xf32> to vector<16x1xf32>
    %cst_41 = arith.constant 3.200000e+01 : f32
    %169 = vector.broadcast %cst_41 : f32 to vector<16x1xf32>
    %170 = arith.divf %168, %169 : vector<16x1xf32>
    %171 = vector.broadcast %163 : vector<16x1xf32> to vector<16x32xf32>
    %172 = arith.subf %159, %171 : vector<16x32xf32>
    %cst_42 = arith.constant 9.99999974E-6 : f32
    %173 = vector.broadcast %cst_42 : f32 to vector<16x1xf32>
    %174 = arith.addf %170, %173 : vector<16x1xf32>
    %175 = math.rsqrt %174 : vector<16x1xf32>
    %176 = vector.broadcast %175 : vector<16x1xf32> to vector<16x32xf32>
    %177 = arith.mulf %172, %176 : vector<16x32xf32>
    %178 = vector.broadcast %8 : vector<1x32xf32> to vector<16x32xf32>
    %179 = arith.mulf %177, %178 : vector<16x32xf32>
    %180 = vector.broadcast %9 : vector<1x32xf32> to vector<16x32xf32>
    %181 = arith.addf %179, %180 : vector<16x32xf32>
    %182 = arith.truncf %181 : vector<16x32xf32> to vector<16x32xbf16>
    %c0_43 = arith.constant 0 : index
    %c0_44 = arith.constant 0 : index
    %c0_45 = arith.constant 0 : index
    %183 = vector.load %arg7[%c0_43, %c0_44, %c0_45] : memref<1x32x128xbf16, #tpu.memory_space<vmem>>, vector<1x32x128xbf16>
    %184 = vector.shape_cast %183 : vector<1x32x128xbf16> to vector<32x128xbf16>
    %cst_46 = arith.constant dense<0.000000e+00> : vector<16x128xf32>
    %185 = tpu.matmul %182, %184, %cst_46 {dimension_numbers = #tpu.dot_dimension_numbers<[1], [0], [0], [1], [0, 0, 1, 1], [], []>} : vector<16x32xbf16>, vector<32x128xbf16>, vector<16x128xf32> -> vector<16x128xf32>
    %c0_47 = arith.constant 0 : index
    %c0_48 = arith.constant 0 : index
    %c0_49 = arith.constant 0 : index
    %186 = vector.load %arg8[%c0_47, %c0_48, %c0_49] : memref<1x1x128xf32, #tpu.memory_space<vmem>>, vector<1x1x128xf32>
    %187 = vector.shape_cast %186 : vector<1x1x128xf32> to vector<1x128xf32>
    %188 = vector.broadcast %187 : vector<1x128xf32> to vector<16x128xf32>
    %189 = arith.addf %185, %188 : vector<16x128xf32>
    %cst_50 = arith.constant 1.702000e+00 : f32
    %190 = vector.broadcast %cst_50 : f32 to vector<16x128xf32>
    %191 = arith.mulf %190, %189 : vector<16x128xf32>
    %192 = arith.negf %191 : vector<16x128xf32>
    %193 = math.exp %192 : vector<16x128xf32>
    %cst_51 = arith.constant 1.000000e+00 : f32
    %194 = vector.broadcast %cst_51 : f32 to vector<16x128xf32>
    %195 = arith.addf %194, %193 : vector<16x128xf32>
    %196 = arith.divf %194, %195 : vector<16x128xf32>
    %197 = arith.mulf %189, %196 : vector<16x128xf32>
    %198 = arith.truncf %197 : vector<16x128xf32> to vector<16x128xbf16>
    %c0_52 = arith.constant 0 : index
    %c0_53 = arith.constant 0 : index
    %c0_54 = arith.constant 0 : index
    %199 = vector.load %arg9[%c0_52, %c0_53, %c0_54] : memref<1x128x32xbf16, #tpu.memory_space<vmem>>, vector<1x128x32xbf16>
    %200 = vector.shape_cast %199 : vector<1x128x32xbf16> to vector<128x32xbf16>
    %cst_55 = arith.constant dense<0.000000e+00> : vector<16x32xf32>
    %201 = tpu.matmul %198, %200, %cst_55 {dimension_numbers = #tpu.dot_dimension_numbers<[1], [0], [0], [1], [0, 0, 1, 1], [], []>} : vector<16x128xbf16>, vector<128x32xbf16>, vector<16x32xf32> -> vector<16x32xf32>
    %202 = arith.addf %159, %201 : vector<16x32xf32>
    %203 = vector.broadcast %11 : vector<1x32xf32> to vector<16x32xf32>
    %204 = arith.addf %202, %203 : vector<16x32xf32>
    %c0_56 = arith.constant 0 : index
    %c0_57 = arith.constant 0 : index
    %205 = vector.load %arg13[%c0_56, %c0_57] : memref<16x32xf32, #tpu.memory_space<vmem>>, vector<16x32xf32>
    tpu.vector_store %arg13[%c0_56, %c0_57], %204 {strides = array<i32>} : memref<16x32xf32, #tpu.memory_space<vmem>>, vector<16x32xf32>,
    %c1_i32 = arith.constant 1 : i32
    %206 = arith.cmpi eq, %arg0, %c1_i32 : i32
    %207 = arith.extui %206 : i1 to i32
    %c0_i32_58 = arith.constant 0 : i32
    %208 = arith.cmpi ne, %207, %c0_i32_58 : i32
    scf.if %208 {
      %c0_59 = arith.constant 0 : index
      %c0_60 = arith.constant 0 : index
      %209 = vector.load %arg10[%c0_59, %c0_60] : memref<2x32xf32, #tpu.memory_space<vmem>>, vector<2x32xf32>
      %c0_61 = arith.constant 0 : index
      %c0_62 = arith.constant 0 : index
      %210 = vector.load %arg2[%c0_61, %c0_62] : memref<2x16xf32, #tpu.memory_space<vmem>>, vector<2x16xf32>
      %cst_63 = arith.constant dense<0.000000e+00> : vector<2x32xf32>
      %211 = tpu.matmul %210, %204, %cst_63 {dimension_numbers = #tpu.dot_dimension_numbers<[1], [0], [0], [1], [0, 0, 1, 1], [], []>} : vector<2x16xf32>, vector<16x32xf32>, vector<2x32xf32> -> vector<2x32xf32>
      %212 = vector.extract_strided_slice %209 {offsets = [0, 0], sizes = [1, 32], strides = [1, 1]} : vector<2x32xf32> to vector<1x32xf32>
      %213 = vector.extract_strided_slice %209 {offsets = [1, 0], sizes = [1, 32], strides = [1, 1]} : vector<2x32xf32> to vector<1x32xf32>
      %cst_64 = arith.constant dense<0.000000e+00> : vector<2xf32>
      %214 = vector.multi_reduction <add>, %211, %cst_64 [1] : vector<2x32xf32> to vector<2xf32>
      %215 = vector.shape_cast %214 : vector<2xf32> to vector<2x1xf32>
      %cst_65 = arith.constant 3.200000e+01 : f32
      %216 = vector.broadcast %cst_65 : f32 to vector<2x1xf32>
      %217 = arith.divf %215, %216 : vector<2x1xf32>
      %218 = vector.broadcast %217 : vector<2x1xf32> to vector<2x32xf32>
      %219 = arith.subf %211, %218 : vector<2x32xf32>
      %220 = arith.mulf %219, %219 : vector<2x32xf32>
      %cst_66 = arith.constant dense<0.000000e+00> : vector<2xf32>
      %221 = vector.multi_reduction <add>, %220, %cst_66 [1] : vector<2x32xf32> to vector<2xf32>
      %222 = vector.shape_cast %221 : vector<2xf32> to vector<2x1xf32>
      %cst_67 = arith.constant 3.200000e+01 : f32
      %223 = vector.broadcast %cst_67 : f32 to vector<2x1xf32>
      %224 = arith.divf %222, %223 : vector<2x1xf32>
      %225 = vector.broadcast %217 : vector<2x1xf32> to vector<2x32xf32>
      %226 = arith.subf %211, %225 : vector<2x32xf32>
      %cst_68 = arith.constant 9.99999974E-6 : f32
      %227 = vector.broadcast %cst_68 : f32 to vector<2x1xf32>
      %228 = arith.addf %224, %227 : vector<2x1xf32>
      %229 = math.rsqrt %228 : vector<2x1xf32>
      %230 = vector.broadcast %229 : vector<2x1xf32> to vector<2x32xf32>
      %231 = arith.mulf %226, %230 : vector<2x32xf32>
      %232 = vector.broadcast %212 : vector<1x32xf32> to vector<2x32xf32>
      %233 = arith.mulf %231, %232 : vector<2x32xf32>
      %234 = vector.broadcast %213 : vector<1x32xf32> to vector<2x32xf32>
      %235 = arith.addf %233, %234 : vector<2x32xf32>
      %236 = arith.truncf %235 : vector<2x32xf32> to vector<2x32xbf16>
      %c0_69 = arith.constant 0 : index
      %c0_70 = arith.constant 0 : index
      %237 = vector.load %arg11[%c0_69, %c0_70] : memref<32x128xbf16, #tpu.memory_space<vmem>>, vector<32x128xbf16>
      %cst_71 = arith.constant dense<0.000000e+00> : vector<2x128xf32>
      %238 = tpu.matmul %236, %237, %cst_71 {dimension_numbers = #tpu.dot_dimension_numbers<[1], [0], [0], [1], [0, 0, 1, 1], [], []>} : vector<2x32xbf16>, vector<32x128xbf16>, vector<2x128xf32> -> vector<2x128xf32>
      %c0_72 = arith.constant 0 : index
      %c0_73 = arith.constant 0 : index
      %239 = vector.load %arg12[%c0_72, %c0_73] : memref<2x128xf32, #tpu.memory_space<vmem>>, vector<2x128xf32>
      tpu.vector_store %arg12[%c0_72, %c0_73], %238 {strides = array<i32>} : memref<2x128xf32, #tpu.memory_space<vmem>>, vector<2x128xf32>,
    } else {
    }
    return
  }
  func.func @transform_0(%arg0: i32) -> (i32, i32) {
    %c0_i32 = arith.constant 0 : i32
    %c0_i32_0 = arith.constant 0 : i32
    %c0_i32_1 = arith.constant 0 : i32
    return %c0_i32, %c0_i32_0 : i32, i32
  }
  func.func @transform_1(%arg0: i32) -> (i32, i32) {
    %c0_i32 = arith.constant 0 : i32
    %c0_i32_0 = arith.constant 0 : i32
    %c0_i32_1 = arith.constant 0 : i32
    return %c0_i32, %c0_i32_0 : i32, i32
  }
  func.func @transform_2(%arg0: i32) -> (i32, i32, i32) {
    %c0_i32 = arith.constant 0 : i32
    %c0_i32_0 = arith.constant 0 : i32
    %c0_i32_1 = arith.constant 0 : i32
    return %arg0, %c0_i32, %c0_i32_0 : i32, i32, i32
  }
  func.func @transform_3(%arg0: i32) -> (i32, i32, i32) {
    %c0_i32 = arith.constant 0 : i32
    %c0_i32_0 = arith.constant 0 : i32
    %c0_i32_1 = arith.constant 0 : i32
    return %arg0, %c0_i32, %c0_i32_0 : i32, i32, i32
  }
  func.func @transform_4(%arg0: i32) -> (i32, i32, i32) {
    %c0_i32 = arith.constant 0 : i32
    %c0_i32_0 = arith.constant 0 : i32
    %c0_i32_1 = arith.constant 0 : i32
    return %arg0, %c0_i32, %c0_i32_0 : i32, i32, i32
  }
  func.func @transform_5(%arg0: i32) -> (i32, i32, i32) {
    %c0_i32 = arith.constant 0 : i32
    %c0_i32_0 = arith.constant 0 : i32
    %c0_i32_1 = arith.constant 0 : i32
    return %arg0, %c0_i32, %c0_i32_0 : i32, i32, i32
  }
  func.func @transform_6(%arg0: i32) -> (i32, i32, i32) {
    %c0_i32 = arith.constant 0 : i32
    %c0_i32_0 = arith.constant 0 : i32
    %c0_i32_1 = arith.constant 0 : i32
    return %arg0, %c0_i32, %c0_i32_0 : i32, i32, i32
  }
  func.func @transform_7(%arg0: i32) -> (i32, i32, i32) {
    %c0_i32 = arith.constant 0 : i32
    %c0_i32_0 = arith.constant 0 : i32
    %c0_i32_1 = arith.constant 0 : i32
    return %arg0, %c0_i32, %c0_i32_0 : i32, i32, i32
  }
  func.func @transform_8(%arg0: i32) -> (i32, i32, i32) {
    %c0_i32 = arith.constant 0 : i32
    %c0_i32_0 = arith.constant 0 : i32
    %c0_i32_1 = arith.constant 0 : i32
    return %arg0, %c0_i32, %c0_i32_0 : i32, i32, i32
  }
  func.func @transform_9(%arg0: i32) -> (i32, i32) {
    %c0_i32 = arith.constant 0 : i32
    %c0_i32_0 = arith.constant 0 : i32
    %c0_i32_1 = arith.constant 0 : i32
    return %c0_i32, %c0_i32_0 : i32, i32
  }
  func.func @transform_10(%arg0: i32) -> (i32, i32) {
    %c0_i32 = arith.constant 0 : i32
    %c0_i32_0 = arith.constant 0 : i32
    %c0_i32_1 = arith.constant 0 : i32
    return %c0_i32, %c0_i32_0 : i32, i32
  }
  func.func @transform_11(%arg0: i32) -> (i32, i32) {
    %c0_i32 = arith.constant 0 : i32
    %c0_i32_0 = arith.constant 0 : i32
    %c0_i32_1 = arith.constant 0 : i32
    return %c0_i32, %c0_i32_0 : i32, i32
  }
}

</mosaic_0001>

<bundles_post_ra>
// kernel: encode_text.1
= control target key start
LH: loop header
LB: loop body
LE: loop exit
PB: predicated region body
PF: predicated region fallthrough
CT: control target
= control target key end

     0   :  { %s2971_s0 = inlined_call_operand.vmem [shape: f32[16,32], index: 0, kind: input, shape index: {}]   ;;  %s2972_s1 = inlined_call_operand.vmem [shape: f32[2,16], index: 1, kind: input, shape index: {}]   ;;  %s2973_s2 = inlined_call_operand.vmem [shape: f32[2,6,32], index: 2, kind: input, shape index: {}]   ;;  %s2974_s3 = inlined_call_operand.vmem [shape: bf16[2,32,96], index: 3, kind: input, shape index: {}]   ;;  %s2975_s4 = inlined_call_operand.vmem [shape: f32[2,1,96], index: 4, kind: input, shape index: {}]   ;;  %s2976_s5 = inlined_call_operand.vmem [shape: bf16[2,32,32], index: 5, kind: input, shape index: {}]   ;;  %s2977_s6 = inlined_call_operand.vmem [shape: bf16[2,32,128], index: 6, kind: input, shape index: {}]   ;;  %s2978_s7 = inlined_call_operand.vmem [shape: f32[2,1,128], index: 7, kind: input, shape index: {}]   ;;  %s2979_s8 = inlined_call_operand.vmem [shape: bf16[2,128,32], index: 8, kind: input, shape index: {}]   ;;  %s2980_s9 = inlined_call_operand.vmem [shape: f32[2,32], index: 9, kind: input, shape index: {}]   ;;  %s2981_s10 = inlined_call_operand.vmem [shape: bf16[32,128], index: 10, kind: input, shape index: {}]   ;;  %s2982_s11 = inlined_call_operand.hbm [shape: f32[2,128], index: 11, kind: output, shape index: {}]  }
   0x1   :  { %2983 = sst [smem:[#allocation6_spill]] %s2973_s2 }
   0x2   :  { %2984 = sst [smem:[#allocation7_spill]] %s2974_s3 }
   0x3   :  { %16 = vsyncpa [#allocation4], 0  ;;  %s2615_s17 = smov 0  }
   0x4 LB: > { %s2621_s18 = sadd.s32 4294967295, %s2532_s17   ;;  %p2105_p0 = scmp.ge.s32.totalorder %s2532_s17, 1  ;;  %s2532_s17 = sphi %s2615_s17, %s22_s17  }
   0x5   : > { %p388_p1 = scmp.lt.s32.totalorder %s2532_s17, 3 }
   0x7   : > { %p389_p2 = pnand %p2105_p0, %p388_p1 }
   0x8   : > { %p448_p3 = scmp.lt.s32.totalorder (!%p389_p2), %s2621_s18, 1  ;;  %s2985_s2 = sld [smem:[#allocation6_spill]] (!%p389_p2) }
   0x9   : > { %392 = sbr.rel (%p389_p2) target bundleno = 4947 (0x1353), region = 64  ;;  %s2986_s3 = sld [smem:[#allocation7_spill]] (!%p389_p2) }
   0xa   : > { %p2115_p4 = scmp.ne.s32.totalorder (!%p389_p2), %s2621_s18, 0 }
  0x10   : > { %s2627_s19 = scalar_select %p448_p3, %s2621_s18, 1 }
  0x11   : > { %482 = sbr.rel (%p2115_p4) target bundleno = 24 (0x18), region = 68  ;;  %v483_v0 = vld [vmem:[%s2971_s0] sm:$0xff] (!%p2115_p4)  ;;  %vm485_vm0 = vcmask (!%p2115_p4), 261120   ;;  %v484_v1 = vld [vmem:[%s2971_s0 + $0x8] sm:$0xff] (!%p2115_p4) }
  0x12   : > { %s2106_s20 = sshll.u32 %s2627_s19, 3  ;;  %s2162_s21 = sshll.u32 %s2627_s19, 4  ;;  %486 = vst.msk [vmem:[#allocation2] sm:$0xff] (!%p2115_p4), %vm485_vm0, %v483_v0  ;;  %487 = vst.msk [vmem:[#allocation2 + $0x8] sm:$0xff] (!%p2115_p4), %vm485_vm0, %v484_v1 }
  0x13   : > { %s2634_s24 = scalar_lea.vmem %s2985_s2, %s2106_s20  ;;  %s2639_s27 = scalar_lea.vmem %s2986_s3, %s2162_s21 }
  0x14   : > { %s459_s30 = scalar_lea.vmem %s2975_s4, %s2627_s19  ;;  %s2648_s14 = scalar_lea.vmem %s2976_s5, %s2162_s21 }
  0x15   : > { %s2653_s22 = scalar_lea.vmem %s2977_s6, %s2162_s21  ;;  %s472_s25 = scalar_lea.vmem %s2978_s7, %s2627_s19 }
  0x16   : > { %s2165_s26 = sshll.u32 %s2627_s19, 6 }
  0x17   : > { %s2663_s28 = scalar_lea.vmem %s2979_s8, %s2165_s26 }
  0x18 PF: > { %vm497_vm1 = vcmask 261120   ;;  %v2430_v16 = vld [vmem:[%s2639_s27] sm:$0xff]   ;;  %v2534_v17 = vmov 0.0   ;;  %v2431_v18 = vld [vmem:[%s2639_s27 + $0x8] sm:$0xff]   ;;  %vm2535_vm2 = vmmov 0   ;;  %v491_v23 = vlaneseq  ;;  %s2538_s27 = smov 64  }
  0x19   : > { %v2672_v2 = vld [vmem:[#allocation2] sm:$0xff]  ;;  %v2674_v3 = vld [vmem:[#allocation2 + $0x8] sm:$0xff]  ;;  %2222 = vmatprep.subr.bf16.mxu0 %v2534_v17  ;;  %2242 = vmatprep.subr.bf16.mxu1 %v2534_v17  ;;  %vm610_vm3 = vcmask 64512   ;;  %v2537_v55 = vmov -1e+09   ;;  %vm735_vm5 = vcmask 1043456  }
  0x1a   : > { %v498_v4 = vsel %vm497_vm1, %v2672_v2, 0.0  ;;  %v501_v5 = vsel %vm497_vm1, %v2674_v3, 0.0  ;;  %2223 = vmatpush3.bf16.msra.mxu0 %v2430_v16  ;;  %2226 = vmatprep.mubr.msk.bf16.mxu0 %vm2535_vm2, %v2534_v17  ;;  %v2694_v26 = vshrl.u32 %v491_v23, 7  ;;  %v2698_v28 = vld [vmem:[%s2634_s24] sm:$0x3f]  ;;  %s2536_s24 = smov 96  }
  0x1b   : > { %499 = vadd.xlane.f32.xlu0 %v498_v4  ;;  %2224 = vmatprep.subr.bf16.mxu0 %v2534_v17  ;;  %v2116_v41 = vld [vmem:[%s459_s30] ss:$0 sm:$0xff]  ;;  %v494_v54 = vand.u32 127, %v491_v23  ;;  %s2539_s30 = smov 88   ;;  %s2540_s15 = smov 120   ;;  %vm1513_vm6 = vcmask 130048  }
  0x1c   : > { %2244 = vmatprep.mubr.msk.bf16.mxu1 %vm2535_vm2, %v2534_v17  ;;  %v527_v27 = vsub.s32 0, %v2694_v26  ;;  %v533_v32 = vsub.s32 1, %v2694_v26  ;;  %s2541_s16 = smov 56   ;;  %s2542_s20 = smov 80   ;;  %vm1516_vm7 = vcmask 195584  }
  0x1d   : > { %vm495_vm4 = vcmp.le.s32.totalorder %v494_v54, %v2694_v26  ;;  %s2543_s23 = smov 112   ;;  %s2544_s26 = smov 48  }
  0x1e   : > { %2225 = vmatpush3.bf16.msra.mxu0 %v2431_v18  ;;  %v528_v31 = vrot.slane %v2698_v28, %v527_v27  ;;  %v534_v36 = vrot.slane %v2698_v28, %v533_v32  ;;  %v2734_v56 = vsel %vm495_vm4, 0.0, %v2537_v55  ;;  %s2545_s29 = smov 72   ;;  %s2546_s12 = smov 104  }
  0x1f   : > { %502 = vadd.xlane.f32.xlu0 %v501_v5  ;;  %2230 = vmatprep.subr.bf16.mxu0 %v2534_v17  ;;  %s2547_s21 = smov 40   ;;  %s2548_s13 = smov 8  }
  0x20   : > { %s2549_s2 = smov 16   ;;  %s2550_s3 = smov 24  }
  0x21   : > { %p2153_p5 = scmp.ne.s32.totalorder %s2621_s18, 1 }
  0x22   : > { %vm2552_vm8 = vmmov (!%p2153_p5), 0   ;;  %vm1905_vm9 = vcmask (!%p2153_p5), 254976  }
  0xa8   : > { %v500_v6 = vpop.xlane.xlu0 %499 }
  0xa9   : > { %v505_v7 = vmul.f32 0.03125, %v500_v6 }
  0xab   : > { %v507_v8 = vsub.f32 %v2672_v2, %v505_v7 }
  0xac   : > { %v503_v9 = vpop.xlane.xlu0 %502 }
  0xad   : > { %v506_v10 = vmul.f32 0.03125, %v503_v9  ;;  %v509_v11 = vmul.f32 %v507_v8, %v507_v8 }
  0xaf   : > { %v508_v12 = vsub.f32 %v2674_v3, %v506_v10  ;;  %v511_v13 = vsel %vm497_vm1, %v509_v11, 0.0 }
  0xb0   : > { %512 = vadd.xlane.f32.xlu1 %v511_v13 }
  0xb1   : > { %v510_v14 = vmul.f32 %v508_v12, %v508_v12 }
  0xb3   : > { %v514_v15 = vsel %vm497_vm1, %v510_v14, 0.0 }
  0xb4   : > { %515 = vadd.xlane.f32.xlu1 %v514_v15 }
 0x13d   : > { %v513_v19 = vpop.xlane.xlu1 %512 }
 0x13e   : > { %v517_v20 = vmul.f32 0.03125, %v513_v19 }
 0x140   : > { %v519_v21 = vadd.f32 1e-05, %v517_v20 }
 0x141   : > { %v516_v22 = vpop.xlane.xlu1 %515 }
 0x142   : > { %2444 = vrsqrt.f32 %v519_v21  ;;  %v518_v24 = vmul.f32 0.03125, %v516_v22 }
 0x144   : > { %v520_v25 = vadd.f32 1e-05, %v518_v24 }
 0x146   : > { %2446 = vrsqrt.f32 %v520_v25 }
 0x14c   : > { %v2445_v29 = vpop.eup %2444 }
 0x14d   : > { %v523_v30 = vmul.f32 %v2445_v29, %v507_v8 }
 0x14f   : > { %v529_v35 = vmul.f32 %v528_v31, %v523_v30 }
 0x150   : > { %v2447_v33 = vpop.eup %2446 }
 0x151   : > { %v524_v34 = vmul.f32 %v2447_v33, %v508_v12  ;;  %v535_v38 = vadd.f32 %v534_v36, %v529_v35 }
 0x153   : > { %v530_v37 = vmul.f32 %v528_v31, %v524_v34 }
 0x155   : > { %v536_v39 = vadd.f32 %v534_v36, %v530_v37 }
 0x157   : > { %v537_v40 = vpack.c.bf16 %v536_v39, %v535_v38 }
 0x159   : > { %2227 = vmatmul.mubr.msk.bf16.vlgmr.msra.gmra.mrb[0].mxu0 %vm497_vm1, %v537_v40 }
 0x15a   : > { %2232 = vmatprep.mubr.msk.bf16.mxu0 %vm2535_vm2, %v2534_v17 }
 0x22c   : > { %v598_v42 = vpop.f32.mrb[0].mxu0 }
 0x22d   : > { %v599_v43 = vadd.f32 %v2116_v41, %v598_v42  ;;  %v2228_v44 = vpop.f32.mrb[1].mxu0 }
 0x22e   : > { %v601_v45 = vpop.f32.mrb[2].mxu0 }
 0x22f   : > { %v2715_v46 = vpack.c.bf16 %v599_v43, %v599_v43  ;;  %v602_v47 = vadd.f32 %v2116_v41, %v601_v45  ;;  %v2229_v48 = vpop.f32.mrb[3].mxu0 }
 0x231   : > { %v2717_v49 = vpack.c.bf16 %v602_v47, %v602_v47  ;;  %608 = vrot.lane.b32.xlu0 %v2715_v46, %s2536_s24 }
 0x233   : > { %658 = vrot.lane.b32.xlu1 %v2717_v49, %s2536_s24 }
 0x2a3   : > { %v609_v50 = vpop.permute.xlu0 %608 }
 0x2a4   : > { %v615_v51 = vsel %vm610_vm3, %v609_v50, 0 }
 0x2a5   : > { %2231 = vmatpush3.bf16.xpose.msra.mxu0 %v615_v51  ;;  %v659_v52 = vpop.permute.xlu1 %658 }
 0x2a6   : > { %2236 = vmatprep.subr.bf16.mxu0 %v2534_v17  ;;  %v664_v53 = vsel %vm610_vm3, %v659_v52, 0 }
 0x2ac   : > { %2233 = vmatmul.mubr.msk.bf16.vlgmr.msra.gmra.mrb[4].mxu0 %vm610_vm3, %v2715_v46 }
 0x2ad   : > { %2237 = vmatpush3.bf16.xpose.msra.mxu0 %v664_v53  ;;  %2238 = vmatprep.mubr.msk.bf16.mxu0 %vm2535_vm2, %v2534_v17 }
 0x2ae   : > { %2248 = vmatprep.subr.bf16.mxu0 %v2534_v17 }
 0x2b4   : > { %2239 = vmatmul.mubr.msk.bf16.vlgmr.msra.gmra.mrb[8].mxu0 %vm610_vm3, %v2717_v49 }
 0x2b5   : > { %2250 = vmatprep.mubr.msk.bf16.mxu0 %vm2535_vm2, %v2534_v17 }
 0x37f   : > { %v651_v57 = vpop.f32.mrb[4].mxu0 }
 0x380   : > { %v652_v58 = vadd.f32 %v651_v57, %v2734_v56  ;;  %v2234_v59 = vpop.f32.mrb[5].mxu0 }
 0x381   : > { %v654_v60 = vpop.f32.mrb[6].mxu0 }
 0x382   : > { %v2235_v61 = vpop.f32.mrb[7].mxu0  ;;  %v706_v62 = vsel %vm610_vm3, %v652_v58, -inf }
 0x383   : > { %707 = vmax.xlane.f32.xlu1 %v706_v62 }
 0x387   : > { %v700_v63 = vpop.f32.mrb[8].mxu0 }
 0x388   : > { %v701_v0 = vadd.f32 %v700_v63, %v2734_v56  ;;  %v2240_v1 = vpop.f32.mrb[9].mxu0 }
 0x389   : > { %v703_v4 = vpop.f32.mrb[10].mxu0 }
 0x38a   : > { %v2241_v5 = vpop.f32.mrb[11].mxu0  ;;  %v709_v6 = vsel %vm610_vm3, %v701_v0, -inf }
 0x38b   : > { %710 = vmax.xlane.f32.xlu0 %v709_v6 }
 0x394   : > { %779 = vrot.lane.b32.xlu1 %v2717_v49, %s2538_s27 }
 0x398   : > { %829 = vrot.lane.b32.xlu1 %v2715_v46, %s2539_s30 }
 0x410   : > { %v708_v7 = vpop.xlane.xlu1 %707 }
 0x411   : > { %v712_v8 = vsub.f32 %v652_v58, %v708_v7 }
 0x413   : > { %v714_v9 = vmul.f32 1.442695, %v712_v8 }
 0x414   : > { %v780_v10 = vpop.permute.xlu1 %779 }
 0x415   : > { %2448 = vpow2.f32 %v714_v9  ;;  %v785_v11 = vsel %vm735_vm5, %v780_v10, 0 }
 0x416   : > { %2249 = vmatpush3.bf16.msra.mxu0 %v785_v11 }
 0x417   : > { %2260 = vmatprep.subr.bf16.mxu0 %v2534_v17 }
 0x418   : > { %v711_v12 = vpop.xlane.xlu0 %710  ;;  %v830_v21 = vpop.permute.xlu1 %829 }
 0x419   : > { %v713_v13 = vsub.f32 %v701_v0, %v711_v12  ;;  %v835_v31 = vsel %vm610_vm3, %v830_v21, 0 }
 0x41b   : > { %v716_v14 = vmul.f32 1.442695, %v713_v13 }
 0x41d   : > { %2450 = vpow2.f32 %v716_v14 }
 0x41f   : > { %v2449_v15 = vpop.eup %2448 }
 0x420   : > { %v718_v16 = vsel %vm610_vm3, %v2449_v15, 0.0 }
 0x421   : > { %719 = vadd.xlane.f32.xlu0 %v718_v16 }
 0x427   : > { %v2451_v18 = vpop.eup %2450 }
 0x428   : > { %v721_v19 = vsel %vm610_vm3, %v2451_v18, 0.0 }
 0x429   : > { %722 = vadd.xlane.f32.xlu1 %v721_v19 }
 0x437   : > { %730 = vrot.lane.b32.xlu0 %v2715_v46, %s2538_s27 }
 0x43a   : > { %879 = vrot.lane.b32.xlu1 %v2717_v49, %s2539_s30 }
 0x43b   : > { %827 = vrot.lane.b32.xlu0 %v2715_v46, %s2540_s15 }
 0x43e   : > { %877 = vrot.lane.b32.xlu1 %v2717_v49, %s2540_s15 }
 0x4ae   : > { %v720_v20 = vpop.xlane.xlu0 %719 }
 0x4af   : > { %2452 = vrcp.f32 %v720_v20 }
 0x4b2   : > { %v731_v22 = vpop.permute.xlu0 %730 }
 0x4b3   : > { %v737_v23 = vsel %vm735_vm5, %v731_v22, 0 }
 0x4b4   : > { %2243 = vmatpush3.bf16.msra.mxu1 %v737_v23 }
 0x4b5   : > { %2254 = vmatprep.subr.bf16.mxu1 %v2534_v17 }
 0x4b6   : > { %v723_v24 = vpop.xlane.xlu1 %722  ;;  %v828_v37 = vpop.permute.xlu0 %827 }
 0x4b7   : > { %2454 = vrcp.f32 %v723_v24 }
 0x4b9   : > { %v2453_v25 = vpop.eup %2452 }
 0x4ba   : > { %v726_v29 = vmul.f32 %v2453_v25, %v2449_v15  ;;  %v880_v35 = vpop.permute.xlu1 %879 }
 0x4bb   : > { %v885_v38 = vsel %vm610_vm3, %v880_v35, 0 }
 0x4bc   : > { %v728_v30 = vpack.c.bf16 %v726_v29, %v726_v29 }
 0x4be   : > { %2245 = vmatmul.mubr.msk.bf16.vlgmr.msra.gmra.mrb[0].mxu1 %vm610_vm3, %v728_v30  ;;  %v878_v39 = vpop.permute.xlu1 %877 }
 0x4bf   : > { %2255 = vmatpush3.bf16.xpose.msra.mxu1 %v835_v31  ;;  %2256 = vmatprep.mubr.msk.bf16.mxu1 %vm2535_vm2, %v2534_v17 }
 0x4c0   : > { %2266 = vmatprep.subr.bf16.mxu1 %v2534_v17 }
 0x4c1   : > { %v2455_v33 = vpop.eup %2454 }
 0x4c2   : > { %v727_v34 = vmul.f32 %v2455_v33, %v2451_v18 }
 0x4c4   : > { %v729_v36 = vpack.c.bf16 %v727_v34, %v727_v34 }
 0x4c6   : > { %2251 = vmatmul.mubr.msk.bf16.vlgmr.msra.gmra.mrb[12].mxu0 %vm610_vm3, %v729_v36  ;;  %2257 = vmatmul.mubr.msk.bf16.vlgmr.msra.gmra.mrb[4].mxu1 %vm610_vm3, %v828_v37 }
 0x4c7   : > { %2261 = vmatpush3.bf16.xpose.msra.mxu0 %v885_v38  ;;  %2262 = vmatprep.mubr.msk.bf16.mxu0 %vm2535_vm2, %v2534_v17 }
 0x4c8   : > { %2272 = vmatprep.subr.bf16.mxu0 %v2534_v17  ;;  %2268 = vmatprep.mubr.msk.bf16.mxu1 %vm2535_vm2, %v2534_v17 }
 0x4ce   : > { %2263 = vmatmul.mubr.msk.bf16.vlgmr.msra.gmra.mrb[16].mxu0 %vm610_vm3, %v878_v39 }
 0x4cf   : > { %2274 = vmatprep.mubr.msk.bf16.mxu0 %vm2535_vm2, %v2534_v17 }
 0x591   : > { %v2768_v40 = vpop.f32.mrb[0].mxu1 }
 0x592   : > { %v2246_v41 = vpop.f32.mrb[1].mxu1 }
 0x593   : > { %v776_v42 = vpop.f32.mrb[2].mxu1 }
 0x594   : > { %v2247_v43 = vpop.f32.mrb[3].mxu1 }
 0x599   : > { %v2770_v44 = vpop.f32.mrb[12].mxu0  ;;  %v871_v45 = vpop.f32.mrb[4].mxu1 }
 0x59a   : > { %v872_v47 = vadd.f32 %v871_v45, %v2734_v56  ;;  %v2252_v48 = vpop.f32.mrb[13].mxu0  ;;  %v2258_v50 = vpop.f32.mrb[5].mxu1 }
 0x59b   : > { %v824_v51 = vpop.f32.mrb[14].mxu0  ;;  %v874_v52 = vpop.f32.mrb[6].mxu1 }
 0x59c   : > { %v2253_v53 = vpop.f32.mrb[15].mxu0  ;;  %v2259_v54 = vpop.f32.mrb[7].mxu1  ;;  %v927_v55 = vsel %vm610_vm3, %v872_v47, -inf }
 0x59d   : > { %928 = vmax.xlane.f32.xlu0 %v927_v55 }
 0x5a1   : > { %v921_v57 = vpop.f32.mrb[16].mxu0 }
 0x5a2   : > { %v922_v58 = vadd.f32 %v921_v57, %v2734_v56  ;;  %v2264_v59 = vpop.f32.mrb[17].mxu0 }
 0x5a3   : > { %v924_v60 = vpop.f32.mrb[18].mxu0 }
 0x5a4   : > { %v2265_v61 = vpop.f32.mrb[19].mxu0  ;;  %v930_v62 = vsel %vm610_vm3, %v922_v58, -inf }
 0x5a5   : > { %931 = vmax.xlane.f32.xlu1 %v930_v62 }
 0x5b6   : > { %999 = vrot.lane.b32.xlu1 %v2717_v49, %s2541_s16 }
 0x5ba   : > { %1049 = vrot.lane.b32.xlu1 %v2715_v46, %s2542_s20 }
 0x5be   : > { %1099 = vrot.lane.b32.xlu1 %v2717_v49, %s2542_s20 }
 0x5c2   : > { %1097 = vrot.lane.b32.xlu1 %v2717_v49, %s2543_s23 }
 0x62a   : > { %v929_v63 = vpop.xlane.xlu0 %928 }
 0x62b   : > { %v933_v0 = vsub.f32 %v872_v47, %v929_v63 }
 0x62d   : > { %v935_v1 = vmul.f32 1.442695, %v933_v0 }
 0x62f   : > { %2456 = vpow2.f32 %v935_v1 }
 0x632   : > { %v932_v4 = vpop.xlane.xlu1 %931 }
 0x633   : > { %v934_v5 = vsub.f32 %v922_v58, %v932_v4 }
 0x635   : > { %v937_v6 = vmul.f32 1.442695, %v934_v5 }
 0x636   : > { %v1000_v7 = vpop.permute.xlu1 %999 }
 0x637   : > { %2458 = vpow2.f32 %v937_v6  ;;  %v1005_v8 = vsel %vm735_vm5, %v1000_v7, 0 }
 0x638   : > { %2273 = vmatpush3.bf16.msra.mxu0 %v1005_v8 }
 0x639   : > { %v2457_v9 = vpop.eup %2456  ;;  %2284 = vmatprep.subr.bf16.mxu0 %v2534_v17 }
 0x63a   : > { %v939_v10 = vsel %vm610_vm3, %v2457_v9, 0.0  ;;  %v1050_v21 = vpop.permute.xlu1 %1049 }
 0x63b   : > { %940 = vadd.xlane.f32.xlu0 %v939_v10  ;;  %v1055_v25 = vsel %vm610_vm3, %v1050_v21, 0 }
 0x63e   : > { %v1100_v24 = vpop.permute.xlu1 %1099 }
 0x63f   : > { %v1105_v30 = vsel %vm610_vm3, %v1100_v24, 0 }
 0x641   : > { %v2459_v11 = vpop.eup %2458 }
 0x642   : > { %v942_v12 = vsel %vm610_vm3, %v2459_v11, 0.0  ;;  %v1098_v33 = vpop.permute.xlu1 %1097 }
 0x643   : > { %943 = vadd.xlane.f32.xlu0 %v942_v12 }
 0x659   : > { %951 = vrot.lane.b32.xlu0 %v2715_v46, %s2541_s16 }
 0x65d   : > { %1047 = vrot.lane.b32.xlu0 %v2715_v46, %s2543_s23 }
 0x6c8   : > { %v941_v13 = vpop.xlane.xlu0 %940 }
 0x6c9   : > { %2460 = vrcp.f32 %v941_v13 }
 0x6d0   : > { %v944_v14 = vpop.xlane.xlu0 %943 }
 0x6d1   : > { %2462 = vrcp.f32 %v944_v14 }
 0x6d3   : > { %v2461_v15 = vpop.eup %2460 }
 0x6d4   : > { %v947_v16 = vmul.f32 %v2461_v15, %v2457_v9  ;;  %v952_v18 = vpop.permute.xlu0 %951 }
 0x6d5   : > { %v957_v19 = vsel %vm735_vm5, %v952_v18, 0 }
 0x6d6   : > { %2267 = vmatpush3.bf16.msra.mxu1 %v957_v19  ;;  %v949_v20 = vpack.c.bf16 %v947_v16, %v947_v16 }
 0x6d7   : > { %2278 = vmatprep.subr.bf16.mxu1 %v2534_v17 }
 0x6d8   : > { %v1048_v31 = vpop.permute.xlu0 %1047 }
 0x6d9   : > { %2269 = vmatmul.mubr.msk.bf16.vlgmr.msra.gmra.mrb[8].mxu1 %vm610_vm3, %v949_v20 }
 0x6da   : > { %2280 = vmatprep.mubr.msk.bf16.mxu1 %vm2535_vm2, %v2534_v17 }
 0x6db   : > { %v2463_v22 = vpop.eup %2462 }
 0x6dc   : > { %v948_v23 = vmul.f32 %v2463_v22, %v2459_v11 }
 0x6de   : > { %v950_v29 = vpack.c.bf16 %v948_v23, %v948_v23 }
 0x6df   : > { %2279 = vmatpush3.bf16.xpose.msra.mxu1 %v1055_v25 }
 0x6e0   : > { %2275 = vmatmul.mubr.msk.bf16.vlgmr.msra.gmra.mrb[20].mxu0 %vm610_vm3, %v950_v29  ;;  %2290 = vmatprep.subr.bf16.mxu1 %v2534_v17 }
 0x6e1   : > { %2285 = vmatpush3.bf16.xpose.msra.mxu0 %v1105_v30  ;;  %2286 = vmatprep.mubr.msk.bf16.mxu0 %vm2535_vm2, %v2534_v17 }
 0x6e2   : > { %2296 = vmatprep.subr.bf16.mxu0 %v2534_v17 }
 0x6e6   : > { %2281 = vmatmul.mubr.msk.bf16.vlgmr.msra.gmra.mrb[12].mxu1 %vm610_vm3, %v1048_v31 }
 0x6e7   : > { %2292 = vmatprep.mubr.msk.bf16.mxu1 %vm2535_vm2, %v2534_v17 }
 0x6e8   : > { %2287 = vmatmul.mubr.msk.bf16.vlgmr.msra.gmra.mrb[24].mxu0 %vm610_vm3, %v1098_v33 }
 0x6e9   : > { %2298 = vmatprep.mubr.msk.bf16.mxu0 %vm2535_vm2, %v2534_v17 }
 0x7ac   : > { %v2804_v34 = vpop.f32.mrb[8].mxu1 }
 0x7ad   : > { %v2270_v35 = vpop.f32.mrb[9].mxu1 }
 0x7ae   : > { %v996_v36 = vpop.f32.mrb[10].mxu1 }
 0x7af   : > { %v2271_v37 = vpop.f32.mrb[11].mxu1 }
 0x7b3   : > { %v2806_v38 = vpop.f32.mrb[20].mxu0 }
 0x7b4   : > { %v2415_v39 = vpack.i.bf16 %v2806_v38, %v2804_v34  ;;  %v2276_v41 = vpop.f32.mrb[21].mxu0 }
 0x7b5   : > { %v1044_v42 = vpop.f32.mrb[22].mxu0 }
 0x7b6   : > { %v2277_v43 = vpop.f32.mrb[23].mxu0 }
 0x7b9   : > { %v1091_v45 = vpop.f32.mrb[12].mxu1 }
 0x7ba   : > { %v1092_v47 = vadd.f32 %v1091_v45, %v2734_v56  ;;  %v2282_v48 = vpop.f32.mrb[13].mxu1 }
 0x7bb   : > { %v1094_v50 = vpop.f32.mrb[14].mxu1  ;;  %v1141_v51 = vpop.f32.mrb[24].mxu0 }
 0x7bc   : > { %v1142_v52 = vadd.f32 %v1141_v51, %v2734_v56  ;;  %v2283_v53 = vpop.f32.mrb[15].mxu1  ;;  %v2288_v54 = vpop.f32.mrb[25].mxu0  ;;  %v1147_v55 = vsel %vm610_vm3, %v1092_v47, -inf }
 0x7bd   : > { %1148 = vmax.xlane.f32.xlu0 %v1147_v55  ;;  %v1144_v57 = vpop.f32.mrb[26].mxu0 }
 0x7be   : > { %v2289_v58 = vpop.f32.mrb[27].mxu0  ;;  %v1150_v59 = vsel %vm610_vm3, %v1142_v52, -inf }
 0x7bf   : > { %1151 = vmax.xlane.f32.xlu1 %v1150_v59 }
 0x7d0   : > { %1219 = vrot.lane.b32.xlu1 %v2717_v49, %s2544_s26 }
 0x7d4   : > { %1269 = vrot.lane.b32.xlu1 %v2715_v46, %s2545_s29 }
 0x7d8   : > { %1319 = vrot.lane.b32.xlu1 %v2717_v49, %s2545_s29 }
 0x7dc   : > { %1317 = vrot.lane.b32.xlu1 %v2717_v49, %s2546_s12 }
 0x84a   : > { %v1149_v60 = vpop.xlane.xlu0 %1148 }
 0x84b   : > { %v1153_v61 = vsub.f32 %v1092_v47, %v1149_v60 }
 0x84c   : > { %v1152_v62 = vpop.xlane.xlu1 %1151 }
 0x84d   : > { %v1155_v63 = vmul.f32 1.442695, %v1153_v61  ;;  %v1154_v0 = vsub.f32 %v1142_v52, %v1152_v62 }
 0x84f   : > { %2464 = vpow2.f32 %v1155_v63  ;;  %v1157_v1 = vmul.f32 1.442695, %v1154_v0 }
 0x850   : > { %v1220_v4 = vpop.permute.xlu1 %1219 }
 0x851   : > { %2466 = vpow2.f32 %v1157_v1  ;;  %v1225_v5 = vsel %vm735_vm5, %v1220_v4, 0 }
 0x852   : > { %2297 = vmatpush3.bf16.msra.mxu0 %v1225_v5 }
 0x853   : > { %2308 = vmatprep.subr.bf16.mxu0 %v2534_v17 }
 0x854   : > { %v1270_v15 = vpop.permute.xlu1 %1269 }
 0x855   : > { %v1275_v22 = vsel %vm610_vm3, %v1270_v15, 0  ;;  %v2433_v15 = vld [vmem:[%s2648_s14 + $0x8] sm:$0xff]  }
 0x858   : > { %v1320_v21 = vpop.permute.xlu1 %1319 }
 0x859   : > { %v2465_v6 = vpop.eup %2464  ;;  %v1325_v24 = vsel %vm610_vm3, %v1320_v21, 0 }
 0x85a   : > { %v1159_v7 = vsel %vm610_vm3, %v2465_v6, 0.0 }
 0x85b   : > { %v2467_v8 = vpop.eup %2466  ;;  %1160 = vadd.xlane.f32.xlu0 %v1159_v7 }
 0x85c   : > { %v1162_v9 = vsel %vm610_vm3, %v2467_v8, 0.0  ;;  %v1318_v29 = vpop.permute.xlu1 %1317 }
 0x85f   : > { %1163 = vadd.xlane.f32.xlu0 %v1162_v9 }
 0x875   : > { %1171 = vrot.lane.b32.xlu0 %v2715_v46, %s2544_s26 }
 0x879   : > { %1267 = vrot.lane.b32.xlu0 %v2715_v46, %s2546_s12 }
 0x8e8   : > { %v1161_v10 = vpop.xlane.xlu0 %1160 }
 0x8e9   : > { %2468 = vrcp.f32 %v1161_v10 }
 0x8ec   : > { %v1164_v11 = vpop.xlane.xlu0 %1163 }
 0x8ed   : > { %2470 = vrcp.f32 %v1164_v11 }
 0x8f0   : > { %v1172_v12 = vpop.permute.xlu0 %1171 }
 0x8f1   : > { %v1177_v13 = vsel %vm735_vm5, %v1172_v12, 0 }
 0x8f2   : > { %2291 = vmatpush3.bf16.msra.mxu1 %v1177_v13 }
 0x8f3   : > { %v2469_v14 = vpop.eup %2468  ;;  %2302 = vmatprep.subr.bf16.mxu1 %v2534_v17 }
 0x8f4   : > { %v1167_v16 = vmul.f32 %v2469_v14, %v2465_v6  ;;  %v1268_v25 = vpop.permute.xlu0 %1267  ;;  %v2432_v14 = vld [vmem:[%s2648_s14] sm:$0xff]  }
 0x8f6   : > { %v1169_v18 = vpack.c.bf16 %v1167_v16, %v1167_v16 }
 0x8f7   : > { %v2471_v19 = vpop.eup %2470 }
 0x8f8   : > { %v1168_v20 = vmul.f32 %v2471_v19, %v2467_v8  ;;  %2293 = vmatmul.mubr.msk.bf16.vlgmr.msra.gmra.mrb[16].mxu1 %vm610_vm3, %v1169_v18 }
 0x8f9   : > { %2304 = vmatprep.mubr.msk.bf16.mxu1 %vm2535_vm2, %v2534_v17 }
 0x8fa   : > { %v1170_v23 = vpack.c.bf16 %v1168_v20, %v1168_v20 }
 0x8fb   : > { %2303 = vmatpush3.bf16.xpose.msra.mxu1 %v1275_v22 }
 0x8fc   : > { %2299 = vmatmul.mubr.msk.bf16.vlgmr.msra.gmra.mrb[28].mxu0 %vm610_vm3, %v1170_v23  ;;  %2314 = vmatprep.subr.bf16.mxu1 %v2534_v17 }
 0x8fd   : > { %2309 = vmatpush3.bf16.xpose.msra.mxu0 %v1325_v24  ;;  %2310 = vmatprep.mubr.msk.bf16.mxu0 %vm2535_vm2, %v2534_v17 }
 0x8fe   : > { %2320 = vmatprep.subr.bf16.mxu0 %v2534_v17 }
 0x902   : > { %2305 = vmatmul.mubr.msk.bf16.vlgmr.msra.gmra.mrb[20].mxu1 %vm610_vm3, %v1268_v25 }
 0x903   : > { %2316 = vmatprep.mubr.msk.bf16.mxu1 %vm2535_vm2, %v2534_v17 }
 0x904   : > { %2311 = vmatmul.mubr.msk.bf16.vlgmr.msra.gmra.mrb[32].mxu0 %vm610_vm3, %v1318_v29 }
 0x905   : > { %2322 = vmatprep.mubr.msk.bf16.mxu0 %vm2535_vm2, %v2534_v17 }
 0x9cb   : > { %v1213_v30 = vpop.f32.mrb[16].mxu1 }
 0x9cc   : > { %v2294_v31 = vpop.f32.mrb[17].mxu1 }
 0x9cd   : > { %v1216_v33 = vpop.f32.mrb[18].mxu1 }
 0x9ce   : > { %v2295_v35 = vpop.f32.mrb[19].mxu1 }
 0x9cf   : > { %v1261_v36 = vpop.f32.mrb[28].mxu0 }
 0x9d0   : > { %v2420_v37 = vpack.i.bf16 %v1261_v36, %v1213_v30  ;;  %v2300_v41 = vpop.f32.mrb[29].mxu0 }
 0x9d1   : > { %v1264_v42 = vpop.f32.mrb[30].mxu0 }
 0x9d2   : > { %v2301_v43 = vpop.f32.mrb[31].mxu0 }
 0x9d5   : > { %v1311_v45 = vpop.f32.mrb[20].mxu1 }
 0x9d6   : > { %v1312_v47 = vadd.f32 %v1311_v45, %v2734_v56  ;;  %v2306_v48 = vpop.f32.mrb[21].mxu1 }
 0x9d7   : > { %v1314_v50 = vpop.f32.mrb[22].mxu1  ;;  %v1361_v51 = vpop.f32.mrb[32].mxu0 }
 0x9d8   : > { %v1362_v52 = vadd.f32 %v1361_v51, %v2734_v56  ;;  %v2307_v53 = vpop.f32.mrb[23].mxu1  ;;  %v2312_v54 = vpop.f32.mrb[33].mxu0  ;;  %v1367_v55 = vsel %vm610_vm3, %v1312_v47, -inf }
 0x9d9   : > { %1368 = vmax.xlane.f32.xlu0 %v1367_v55  ;;  %v1364_v57 = vpop.f32.mrb[34].mxu0  ;;  %v1584_v53 = vsub.s32 4, %v2694_v26 }
 0x9da   : > { %v2313_v58 = vpop.f32.mrb[35].mxu0  ;;  %v1370_v59 = vsel %vm610_vm3, %v1362_v52, -inf }
 0x9db   : > { %1371 = vmax.xlane.f32.xlu1 %v1370_v59 }
 0x9ec   : > { %1439 = vrot.lane.b32.xlu1 %v2717_v49, %s2547_s21 }
 0x9f0   : > { %2416 = vrot.lane.b32.xlu1 %v2415_v39, %s2548_s13 }
 0x9f4   : > { %2421 = vrot.lane.b32.xlu1 %v2420_v37, %s2549_s2 }
 0xa66   : > { %v1369_v56 = vpop.xlane.xlu0 %1368 }
 0xa67   : > { %v1373_v60 = vsub.f32 %v1312_v47, %v1369_v56 }
 0xa68   : > { %v1372_v61 = vpop.xlane.xlu1 %1371 }
 0xa69   : > { %v1375_v62 = vmul.f32 1.442695, %v1373_v60  ;;  %v1374_v63 = vsub.f32 %v1362_v52, %v1372_v61 }
 0xa6b   : > { %2472 = vpow2.f32 %v1375_v62  ;;  %v1377_v0 = vmul.f32 1.442695, %v1374_v63 }
 0xa6c   : > { %v1440_v1 = vpop.permute.xlu1 %1439 }
 0xa6d   : > { %2474 = vpow2.f32 %v1377_v0  ;;  %v1445_v4 = vsel %vm735_vm5, %v1440_v1, 0 }
 0xa6e   : > { %2321 = vmatpush3.bf16.msra.mxu0 %v1445_v4 }
 0xa6f   : > { %2334 = vmatprep.subr.bf16.mxu0 %v2534_v17 }
 0xa70   : > { %v2417_v29 = vpop.permute.xlu1 %2416 }
 0xa71   : > { %v2419_v31 = vunpack.i.h.bf16 %v2417_v29  ;;  %v2418_v33 = vunpack.i.l.bf16 %v2417_v29  ;;  %v2436_v29 = vld [vmem:[%s2663_s28] sm:$0xff]  }
 0xa73   : > { %v1512_v41 = vsel %vm610_vm3, %v2770_v44, %v2419_v31  ;;  %v1511_v42 = vsel %vm610_vm3, %v2768_v40, %v2418_v33  ;;  %v1585_v44 = vrot.slane %v2698_v28, %v1584_v53  ;;  %v2438_v31 = vld [vmem:[%s2663_s28 + $0x10] sm:$0xff]   ;;  %v2439_v33 = vld [vmem:[%s2663_s28 + $0x18] sm:$0xff]  }
 0xa74   : > { %v2422_v30 = vpop.permute.xlu1 %2421 }
 0xa75   : > { %v2473_v49 = vpop.eup %2472  ;;  %v2424_v35 = vunpack.i.h.bf16 %v2422_v30  ;;  %v2423_v36 = vunpack.i.l.bf16 %v2422_v30  ;;  %v2437_v30 = vld [vmem:[%s2663_s28 + $0x8] sm:$0xff]  }
 0xa76   : > { %v1379_v34 = vsel %vm610_vm3, %v2473_v49, 0.0 }
 0xa77   : > { %v2475_v38 = vpop.eup %2474  ;;  %1380 = vadd.xlane.f32.xlu0 %v1379_v34  ;;  %v1514_v47 = vsel %vm1513_vm6, %v1511_v42, %v2423_v36  ;;  %v1515_v48 = vsel %vm1513_vm6, %v1512_v41, %v2424_v35  ;;  %v2440_v35 = vld [vmem:[%s2663_s28 + $0x20] sm:$0xff]   ;;  %v2441_v36 = vld [vmem:[%s2663_s28 + $0x28] sm:$0xff]   ;;  %v2443_v41 = vld [vmem:[%s2663_s28 + $0x38] sm:$0xff]  }
 0xa78   : > { %v1382_v39 = vsel %vm610_vm3, %v2475_v38, 0.0  ;;  %v2139_v42 = vld [vmem:[%s472_s25] ss:$0 sm:$0xff] }
 0xa7b   : > { %1383 = vadd.xlane.f32.xlu0 %v1382_v39 }
 0xa91   : > { %1391 = vrot.lane.b32.xlu0 %v2715_v46, %s2547_s21 }
 0xb04   : > { %v1381_v5 = vpop.xlane.xlu0 %1380 }
 0xb05   : > { %2476 = vrcp.f32 %v1381_v5  ;;  %v2434_v5 = vld [vmem:[%s2653_s22] sm:$0xff]  }
 0xb08   : > { %v1384_v6 = vpop.xlane.xlu0 %1383 }
 0xb09   : > { %2478 = vrcp.f32 %v1384_v6  ;;  %v2435_v6 = vld [vmem:[%s2653_s22 + $0x8] sm:$0xff]  }
 0xb0c   : > { %v1392_v7 = vpop.permute.xlu0 %1391 }
 0xb0d   : > { %v1397_v8 = vsel %vm735_vm5, %v1392_v7, 0 }
 0xb0e   : > { %2315 = vmatpush3.bf16.msra.mxu1 %v1397_v8 }
 0xb0f   : > { %v2477_v9 = vpop.eup %2476  ;;  %2326 = vmatprep.subr.bf16.mxu1 %v2534_v17 }
 0xb10   : > { %v1387_v10 = vmul.f32 %v2477_v9, %v2473_v49 }
 0xb12   : > { %v1389_v11 = vpack.c.bf16 %v1387_v10, %v1387_v10 }
 0xb13   : > { %v2479_v12 = vpop.eup %2478 }
 0xb14   : > { %v1388_v13 = vmul.f32 %v2479_v12, %v2475_v38  ;;  %2317 = vmatmul.mubr.msk.bf16.vlgmr.msra.gmra.mrb[24].mxu1 %vm610_vm3, %v1389_v11 }
 0xb15   : > { %2330 = vmatprep.mubr.msk.bf16.mxu1 %vm2535_vm2, %v2534_v17  ;;  %2327 = vmatpush3.bf16.msra.mxu1 %v2432_v14 }
 0xb16   : > { %v1390_v46 = vpack.c.bf16 %v1388_v13, %v1388_v13  ;;  %2328 = vmatprep.subr.bf16.mxu1 %v2534_v17  ;;  %v1616_v13 = vsub.s32 2, %v2694_v26 }
 0xb18   : > { %2323 = vmatmul.mubr.msk.bf16.vlgmr.msra.gmra.mrb[36].mxu0 %vm610_vm3, %v1390_v46  ;;  %v1617_v14 = vrot.slane %v2698_v28, %v1616_v13 }
 0xb19   : > { %2338 = vmatprep.mubr.msk.bf16.mxu0 %vm2535_vm2, %v2534_v17  ;;  %2329 = vmatpush3.bf16.msra.mxu1 %v2433_v15 }
 0xb1a   : > { %2342 = vmatprep.subr.bf16.mxu1 %v2534_v17  ;;  %2335 = vmatpush3.bf16.msra.mxu0 %v2434_v5 }
 0xb1b   : > { %2336 = vmatprep.subr.bf16.mxu0 %v2534_v17 }
 0xb1e   : > { %2337 = vmatpush3.bf16.msra.mxu0 %v2435_v6 }
 0xbe7   : > { %v1433_v16 = vpop.f32.mrb[24].mxu1 }
 0xbe8   : > { %v2318_v18 = vpop.f32.mrb[25].mxu1 }
 0xbe9   : > { %v1436_v19 = vpop.f32.mrb[26].mxu1 }
 0xbea   : > { %v2319_v20 = vpop.f32.mrb[27].mxu1 }
 0xbeb   : > { %v1481_v21 = vpop.f32.mrb[36].mxu0 }
 0xbec   : > { %v2425_v22 = vpack.i.bf16 %v1481_v21, %v1433_v16  ;;  %v2324_v23 = vpop.f32.mrb[37].mxu0  ;;  %v1622_v16 = vsub.s32 3, %v2694_v26 }
 0xbed   : > { %v1484_v24 = vpop.f32.mrb[38].mxu0 }
 0xbee   : > { %2426 = vrot.lane.b32.xlu0 %v2425_v22, %s2550_s3  ;;  %v2325_v25 = vpop.f32.mrb[39].mxu0  ;;  %v1623_v21 = vrot.slane %v2698_v28, %v1622_v16 }
 0xc60   : > { %v2427_v37 = vpop.permute.xlu0 %2426 }
 0xc61   : > { %v2429_v43 = vunpack.i.h.bf16 %v2427_v37  ;;  %v2428_v45 = vunpack.i.l.bf16 %v2427_v37  ;;  %v2442_v37 = vld [vmem:[%s2663_s28 + $0x30] sm:$0xff]  }
 0xc63   : > { %v1518_v50 = vsel %vm1516_vm7, %v1515_v48, %v2429_v43  ;;  %v1517_v51 = vsel %vm1516_vm7, %v1514_v47, %v2428_v45 }
 0xc64   : > { %v1519_v52 = vpack.c.bf16 %v1518_v50, %v1517_v51 }
 0xc66   : > { %2331 = vmatmul.mubr.msk.bf16.vlgmr.msra.gmra.mrb[28].mxu1 %vm497_vm1, %v1519_v52 }
 0xc67   : > { %2358 = vmatprep.mubr.msk.bf16.mxu1 %vm2535_vm2, %v2534_v17  ;;  %2343 = vmatpush3.bf16.msra.mxu1 %v2436_v29 }
 0xc68   : > { %2344 = vmatprep.subr.bf16.mxu1 %v2534_v17 }
 0xc6b   : > { %2345 = vmatpush3.bf16.msra.mxu1 %v2437_v30 }
 0xc6c   : > { %2346 = vmatprep.subr.bf16.mxu1 %v2534_v17 }
 0xc6f   : > { %2347 = vmatpush3.bf16.msra.mxu1 %v2438_v31 }
 0xc70   : > { %2348 = vmatprep.subr.bf16.mxu1 %v2534_v17 }
 0xc73   : > { %2349 = vmatpush3.bf16.msra.mxu1 %v2439_v33 }
 0xc74   : > { %2350 = vmatprep.subr.bf16.mxu1 %v2534_v17 }
 0xc77   : > { %2351 = vmatpush3.bf16.msra.mxu1 %v2440_v35 }
 0xc78   : > { %2352 = vmatprep.subr.bf16.mxu1 %v2534_v17 }
 0xc7b   : > { %2353 = vmatpush3.bf16.msra.mxu1 %v2441_v36 }
 0xc7c   : > { %2354 = vmatprep.subr.bf16.mxu1 %v2534_v17 }
 0xc7f   : > { %2355 = vmatpush3.bf16.msra.mxu1 %v2442_v37 }
 0xc80   : > { %2356 = vmatprep.subr.bf16.mxu1 %v2534_v17 }
 0xc83   : > { %2357 = vmatpush3.bf16.msra.mxu1 %v2443_v41 }
 0xd39   : > { %v1573_v54 = vpop.f32.mrb[28].mxu1 }
 0xd3a   : > { %v1580_v40 = vadd.f32 %v1573_v54, %v2672_v2  ;;  %v2332_v55 = vpop.f32.mrb[29].mxu1 }
 0xd3b   : > { %v1576_v57 = vpop.f32.mrb[30].mxu1 }
 0xd3c   : > { %v2879_v58 = vadd.f32 %v1585_v44, %v1580_v40  ;;  %v1581_v59 = vadd.f32 %v1576_v57, %v2674_v3  ;;  %v2333_v56 = vpop.f32.mrb[31].mxu1 }
 0xd3e   : > { %v2882_v60 = vadd.f32 %v1585_v44, %v1581_v59  ;;  %v1588_v61 = vsel %vm497_vm1, %v2879_v58, 0.0 }
 0xd3f   : > { %1589 = vadd.xlane.f32.xlu1 %v1588_v61 }
 0xd40   : > { %v1591_v62 = vsel %vm497_vm1, %v2882_v60, 0.0 }
 0xd41   : > { %1592 = vadd.xlane.f32.xlu0 %v1591_v62 }
 0xdcc   : > { %v1590_v2 = vpop.xlane.xlu1 %1589 }
 0xdcd   : > { %v1594_v63 = vmul.f32 0.03125, %v1590_v2 }
 0xdce   : > { %v1593_v0 = vpop.xlane.xlu0 %1592 }
 0xdcf   : > { %v1596_v1 = vsub.f32 %v2879_v58, %v1594_v63  ;;  %v1595_v4 = vmul.f32 0.03125, %v1593_v0  ;;  %v1820_v63 = vsub.s32 5, %v2694_v26 }
 0xdd1   : > { %v1597_v3 = vsub.f32 %v2882_v60, %v1595_v4  ;;  %v1598_v49 = vmul.f32 %v1596_v1, %v1596_v1  ;;  %v1821_v0 = vrot.slane %v2698_v28, %v1820_v63  ;;  %v2553_v28 = vmov (!%p2153_p5), 0.0  }
 0xdd2   : > { %2369 = vmatprep.subr.bf16.mxu1 (!%p2153_p5), %v2553_v28 }
 0xdd3   : > { %v1600_v34 = vsel %vm497_vm1, %v1598_v49, 0.0  ;;  %v1599_v38 = vmul.f32 %v1597_v3, %v1597_v3 }
 0xdd4   : > { %1601 = vadd.xlane.f32.xlu0 %v1600_v34 }
 0xdd5   : > { %v1603_v39 = vsel %vm497_vm1, %v1599_v38, 0.0 }
 0xdd8   : > { %1604 = vadd.xlane.f32.xlu0 %v1603_v39 }
 0xe61   : > { %v1602_v7 = vpop.xlane.xlu0 %1601 }
 0xe62   : > { %v1606_v8 = vmul.f32 0.03125, %v1602_v7  ;;  %v2551_v7 = vmov (!%p2153_p5), 0.0|0.0  }
 0xe63   : > { %2377 = vmatprep.subr.bf16.mxu0 (!%p2153_p5), %v2551_v7 }
 0xe64   : > { %v1608_v9 = vadd.f32 1e-05, %v1606_v8 }
 0xe65   : > { %v1605_v10 = vpop.xlane.xlu0 %1604 }
 0xe66   : > { %2480 = vrsqrt.f32 %v1608_v9  ;;  %v1607_v11 = vmul.f32 0.03125, %v1605_v10 }
 0xe68   : > { %v1609_v12 = vadd.f32 1e-05, %v1607_v11 }
 0xe6a   : > { %2482 = vrsqrt.f32 %v1609_v12 }
 0xe70   : > { %v2481_v46 = vpop.eup %2480 }
 0xe71   : > { %v1612_v15 = vmul.f32 %v2481_v46, %v1596_v1 }
 0xe73   : > { %v1618_v19 = vmul.f32 %v1617_v14, %v1612_v15  ;;  %v2493_v15 = vld [vmem:[%s2981_s10 + $0x8] sm:$0xff] (!%p2153_p5)  }
 0xe74   : > { %v2483_v18 = vpop.eup %2482 }
 0xe75   : > { %v1613_v20 = vmul.f32 %v2483_v18, %v1597_v3  ;;  %v1624_v23 = vadd.f32 %v1623_v21, %v1618_v19 }
 0xe77   : > { %v1619_v22 = vmul.f32 %v1617_v14, %v1613_v20  ;;  %v2492_v14 = vld [vmem:[%s2981_s10] sm:$0xff] (!%p2153_p5)  }
 0xe78   : > { %v1830_v20 = vld [vmem:[%s2980_s9] sm:$0x3] (!%p2153_p5) }
 0xe79   : > { %v1625_v24 = vadd.f32 %v1623_v21, %v1619_v22  ;;  %v1922_v21 = vrot.slane (!%p2153_p5), %v1830_v20, %v527_v27 }
 0xe7b   : > { %v1626_v25 = vpack.c.bf16 %v1625_v24, %v1624_v23  ;;  %v1927_v24 = vrot.slane (!%p2153_p5), %v1830_v20, %v533_v32 }
 0xe7d   : > { %2339 = vmatmul.mubr.msk.bf16.vlgmr.msra.gmra.mrb[40].mxu0 %vm497_vm1, %v1626_v25 }
 0xe7e   : > { %2366 = vmatprep.mubr.msk.f32.mxu0 (!%p2153_p5), %vm2552_vm8, %v2553_v28 }
 0xf50   : > { %v1687_v43 = vpop.f32.mrb[40].mxu0 }
 0xf51   : > { %v1688_v45 = vadd.f32 %v2139_v42, %v1687_v43  ;;  %v2340_v47 = vpop.f32.mrb[41].mxu0 }
 0xf52   : > { %v1690_v48 = vpop.f32.mrb[42].mxu0 }
 0xf53   : > { %v2143_v50 = vmul.f32 -1.702, %v1688_v45  ;;  %v1691_v51 = vadd.f32 %v2139_v42, %v1690_v48  ;;  %v2341_v52 = vpop.f32.mrb[43].mxu0 }
 0xf55   : > { %v1698_v53 = vmul.f32 1.442695, %v2143_v50  ;;  %v2144_v44 = vmul.f32 -1.702, %v1691_v51 }
 0xf57   : > { %2484 = vpow2.f32 %v1698_v53  ;;  %v1700_v54 = vmul.f32 1.442695, %v2144_v44 }
 0xf59   : > { %2486 = vpow2.f32 %v1700_v54 }
 0xf61   : > { %v2485_v17 = vpop.eup %2484 }
 0xf62   : > { %v1702_v40 = vadd.f32 1.0, %v2485_v17 }
 0xf63   : > { %v2487_v55 = vpop.eup %2486 }
 0xf64   : > { %2488 = vrcp.f32 %v1702_v40  ;;  %v1703_v57 = vadd.f32 1.0, %v2487_v55 }
 0xf66   : > { %2490 = vrcp.f32 %v1703_v57 }
 0xf6e   : > { %v2489_v59 = vpop.eup %2488 }
 0xf6f   : > { %v1708_v61 = vmul.f32 %v2489_v59, %v1688_v45 }
 0xf70   : > { %v2491_v56 = vpop.eup %2490 }
 0xf71   : > { %v1709_v62 = vmul.f32 %v2491_v56, %v1691_v51 }
 0xf73   : > { %v1710_v2 = vpack.c.bf16 %v1709_v62, %v1708_v61 }
 0xf75   : > { %2359 = vmatmul.mubr.bf16.vlgmr.msra.gmra.mrb[32].mxu1 %v1710_v2 }
 0xf76   : > { %2373 = vmatprep.mubr.msk.bf16.mxu1 (!%p2153_p5), %vm2552_vm8, %v2553_v28  ;;  %2370 = vmatpush3.bf16.msra.mxu1 (!%p2153_p5), %v2492_v14 }
 0xf77   : > { %2371 = vmatprep.subr.bf16.mxu1 (!%p2153_p5), %v2553_v28 }
 0xf7a   : > { %2372 = vmatpush3.bf16.msra.mxu1 (!%p2153_p5), %v2493_v15 }
0x1048   : > { %v1809_v1 = vpop.f32.mrb[32].mxu1 }
0x1049   : > { %v1816_v4 = vadd.f32 %v1809_v1, %v2879_v58  ;;  %v2360_v3 = vpop.f32.mrb[33].mxu1  ;;  %1829 = sbr.rel (%p2153_p5) target bundleno = 4922 (0x133a), region = 72  ;;  %v1831_v58 = vld [vmem:[%s2972_s1] sm:$0x3] (!%p2153_p5) }
0x104a   : > { %v1812_v49 = vpop.f32.mrb[34].mxu1 }
0x104b   : > { %v1822_v34 = vadd.f32 %v1821_v0, %v1816_v4  ;;  %v1817_v38 = vadd.f32 %v1812_v49, %v2882_v60  ;;  %v2361_v39 = vpop.f32.mrb[35].mxu1 }
0x104d   : > { %1824 = vst.msk [vmem:[#allocation2] sm:$0xff] %vm497_vm1, %v1822_v34  ;;  %v1823_v5 = vadd.f32 %v1821_v0, %v1817_v38 }
0x104f   : > { %1825 = vst.msk [vmem:[#allocation2 + $0x8] sm:$0xff] %vm497_vm1, %v1823_v5  ;;  %v2378_v6 = vpack.c.bf16 (!%p2153_p5), %v1823_v5, %v1822_v34 }
0x1051   : > { %2379 = vmatpush3.bf16.msra.mxu0 %v2378_v6 }
0x1054   : > { %2367 = vmatmul.mubr.msk.f32.vlgmr.msra.gmra.mrb[0].mxu0 %vm1513_vm6, %v1831_v58 }
0x1127   : > { %v1901_v60 = vpop.f32.mrb[0].mxu0 }
0x1128   : > { %v2368_v8 = vpop.f32.mrb[1].mxu0  ;;  %v1906_v9 = vsel %vm1905_vm9, %v1901_v60, 0.0 }
0x1129   : > { %1907 = vadd.xlane.f32.xlu0 %v1906_v9 }
0x11b6   : > { %v1908_v10 = vpop.xlane.xlu0 %1907 }
0x11b7   : > { %v1909_v11 = vmul.f32 0.03125, %v1908_v10 }
0x11b9   : > { %v1910_v12 = vsub.f32 %v1901_v60, %v1909_v11 }
0x11bb   : > { %v1911_v13 = vmul.f32 %v1910_v12, %v1910_v12 }
0x11bd   : > { %v1912_v46 = vsel %vm1905_vm9, %v1911_v13, 0.0 }
0x11be   : > { %1913 = vadd.xlane.f32.xlu0 %v1912_v46 }
0x124b   : > { %v1914_v16 = vpop.xlane.xlu0 %1913 }
0x124c   : > { %v1915_v18 = vmul.f32 0.03125, %v1914_v16 }
0x124e   : > { %v1916_v19 = vadd.f32 1e-05, %v1915_v18 }
0x1250   : > { %2494 = vrsqrt.f32 %v1916_v19 }
0x125a   : > { %v2495_v22 = vpop.eup %2494 }
0x125b   : > { %v1918_v23 = vmul.f32 %v2495_v22, %v1910_v12 }
0x125d   : > { %v1923_v25 = vmul.f32 %v1922_v21, %v1918_v23 }
0x125f   : > { %v1928_v29 = vadd.f32 %v1927_v24, %v1923_v25 }
0x1261   : > { %v1929_v30 = vpack.c.bf16 %v1928_v29, %v1928_v29 }
0x1263   : > { %2374 = vmatmul.mubr.msk.bf16.vlgmr.msra.gmra.mrb[0].mxu1 %vm497_vm1, %v1929_v30 }
0x1336   : > { %v1983_v31 = vpop.f32.mrb[0].mxu1 }
0x1337   : > { %1989 = vst [vmem:[#allocation3] sm:$0x3] %v1983_v31  ;;  %v2375_v33 = vpop.f32.mrb[1].mxu1 }
0x1338   : > { %v1986_v35 = vpop.f32.mrb[2].mxu1 }
0x1339   : > { %v2376_v36 = vpop.f32.mrb[3].mxu1 }
0x133a PF: > { %p2384_p6 = scmp.eq.s32.totalorder %s2621_s18, 1  ;;  %s2554_s20 = smov [#allocation3]  }
0x133b   : > { %s1997_s23 = sshll.u32 %s2554_s20, 4  ;;  %s1998_s23 = int_to_ptr.vmem [resolvable:$true] %s1997_s23 }
0x133c   : > { %s2496_s26 = scalar_lea.vmem %s1998_s23, 32  ;;  %p2503_p10 = scmp.lt.s32.totalorder %s1998_s23, %s1998_s23 }
0x133d   : > { %p2497_p7 = scmp.ne.s32.totalorder %s1998_s23, %s2496_s26  ;;  %p2504_p11 = scmp.lt.s32.totalorder %s2496_s26, %s2496_s26 }
0x133f   : > { %p2498_p8 = pnand %p2497_p7, %p2384_p6  ;;  %p2505_p12 = por %p2504_p11, %p2503_p10 }
0x1341   : > { %p2499_p9 = pneg %p2498_p8 }
0x1343   : > { %p2506_p13 = pnand %p2505_p12, %p2499_p9 }
0x1345   : > { %2509 = shalt.err (!%p2506_p13)
}
0x1346   : > { %s2510_s21 = scalar_lea.hbm %s2982_s11, 32 }
0x1347   : > { %p2511_p0 = scmp.ne.s32.totalorder %s2982_s11, %s2510_s21  ;;  %p2516_p3 = scmp.lt.u32.totalorder %s2510_s21, %s2982_s11 }
0x1349   : > { %p2512_p1 = pnand %p2511_p0, %p2384_p6 }
0x134b   : > { %p2513_p2 = pneg %p2512_p1 }
0x134d   : > { %p2518_p4 = pnand %p2516_p3, %p2513_p2 }
0x134f   : > { %2521 = shalt.err (!%p2518_p4)
}
0x1350   : > { %2381 = dma.vmem_to_hbm [thread:$0]  (%p2384_p6), %s1998_s23, 32, %s2982_s11, [#allocation4]  }
0x1351   : > { %2527 = dma.done.wait (%p2384_p6), [#allocation4], 32  }
0x1352   : > { %2529 = vsyncadd (%p2384_p6), [#allocation4], 4294967264 }
0x1353 PF: > { %s22_s17 = sadd.s32 1, %s2532_s17  }
0x1354   : > { %p19_p5 = scmp.ge.s32.totalorder %s22_s17, 4  }
0x1356   :  { %21 = sbr.rel (!%p19_p5) target bundleno = 4 (0x4), region = 117 }
0x135d   :  { %2010 = vsyncpa [#allocation4], 1 }
0x135e   :  { %2012 = vsyncpa [#allocation4 + $0x1], 1 }

</bundles_post_ra>
